<compile_context>
chip_gen: v5e
topology: v5e:2x2
jax: 0.10.0
libtpu: 0.0.40
codegen_flags: <defaults>
</compile_context>

<pallas_src>
import jax
import jax.numpy as jnp
from jax.experimental import pallas as pl
from jax.experimental.pallas import tpu as pltpu


# ----------------------------------------------------------------------------- kernel
def _make_kernel(S, H):
    """Kernel closure over static S (seq/pint) and H (hidden)."""

    def att_kernel(innf_ref,                 # (BT, S*H) bf16   flattened inn = emb + pos
                   w1f_ref, b1_ref,          # (S*H, H) bf16, (1, H) f32    conv1
                   woa_ref, wob_ref, bo_ref,  # (H, H) bf16, (H, H) bf16, (1, H) f32  attn linear
                   w2f_ref, b2_ref,          # (S*H, H) bf16, (1, H) f32    conv2
                   wd_ref, bd_ref,           # (H, OPAD) bf16, (1, OPAD) f32  decoder (lane-padded)
                   out_ref):                 # (BT, OPAD) f32
        f32 = jnp.float32
        bf16 = jnp.bfloat16
        innf = innf_ref[...]                                                  # (BT, S*H) bf16

        # conv1: Conv2d(1,H,[P,H]) over the full (S,H) window == one K = S*H contraction.
        oc1 = jnp.maximum(
            jnp.dot(innf, w1f_ref[...], preferred_element_type=f32) + b1_ref[...],
            0.0)                                                              # (BT, H) f32

        # Attention: context length is 1 -> softmax over the singleton dim is exactly 1.0,
        # so mix[s] == oc1 for every position.  The Linear(2H,H) on cat([mix, inn[s]])
        # splits into a position-shared mix projection and a per-position inn projection.
        base = jnp.dot(oc1.astype(bf16), woa_ref[...],
                       preferred_element_type=f32) + bo_ref[...]              # (BT, H) f32

        # Per-position inn projection + tanh + conv2, accumulated over positions.
        # conv2 is expressed as sum_s oa1[:, s, :] @ w2f[s*H:(s+1)*H, :] to keep the
        # whole path in compact (H,H) matmuls with no in-kernel relayout.
        wob = wob_ref[...]                                                    # (H, H) bf16
        acc = None
        for s in range(S):                                                    # static unroll
            inn_s = innf[:, s * H:(s + 1) * H]                                # (BT, H) bf16
            oa1_s = jnp.tanh(
                jnp.dot(inn_s, wob, preferred_element_type=f32) + base)       # (BT, H) f32
            contrib = jnp.dot(oa1_s.astype(bf16), w2f_ref[s * H:(s + 1) * H, :],
                              preferred_element_type=f32)                     # (BT, H) f32
            acc = contrib if acc is None else acc + contrib

        oc2 = jnp.maximum(acc + b2_ref[...], 0.0)                             # (BT, H) f32

        # Decoder: lane-dense padded output (OPAD = multiple of 128), no masked stores.
        out_ref[...] = (jnp.dot(oc2.astype(bf16), wd_ref[...],
                                preferred_element_type=f32) + bd_ref[...])    # (BT, OPAD)

    return att_kernel


# ----------------------------------------------------------------------------- glue
def prepare_params(params, *, lane_pad=128):
    """One-time weight re-layout / dtype cast.  Hoisted out of the per-forward path."""
    wemb = params["wemb"].astype(jnp.float32)          # (V, H)
    V, H = wemb.shape
    P = params["w1"].shape[2]                          # kernel height == pint == seq_len
    S = P
    O = params["wd"].shape[0]
    OPAD = ((O + lane_pad - 1) // lane_pad) * lane_pad
    OPAD = max(OPAD, lane_pad)                         # lane-dense decoder output

    # Conv weights (K,1,P,Hin) -> ((p,h) -> k): conv == inn.reshape(B, S*H) @ w_flat
    w1f = jnp.transpose(params["w1"][:, 0, :, :], (1, 2, 0)).reshape(S * H, H)
    w2f = jnp.transpose(params["w2"][:, 0, :, :], (1, 2, 0)).reshape(S * H, H)

    wo = params["wo"]                                  # (H, 2H): cols [:H] act on mix, [H:] on inn
    woa = wo[:, :H].T                                  # (H, H)   mix projection (shared by all s)
    wob = wo[:, H:].T                                  # (H, H)   per-position inn projection

    # Lane-dense decoder: zero-pad the output dim to OPAD.
    wdt = jnp.zeros((H, OPAD), jnp.float32).at[:, :O].set(params["wd"].T.astype(jnp.float32))
    bd = jnp.zeros((1, OPAD), jnp.float32).at[:, :O].set(params["bd"].astype(jnp.float32))

    bf16 = jnp.bfloat16
    return dict(
        wemb=wemb, S=int(S), O=int(O), OPAD=int(OPAD),
        w1f=w1f.astype(bf16), b1=params["b1"].reshape(1, H).astype(jnp.float32),
        woa=woa.astype(bf16), wob=wob.astype(bf16),
        bo=params["bo"].reshape(1, H).astype(jnp.float32),
        w2f=w2f.astype(bf16), b2=params["b2"].reshape(1, H).astype(jnp.float32),
        wdt=wdt.astype(bf16), bd=bd,
    )


def att_forward(tokens, position, prep, *, batch_tile=None):
    """Batched forward.  tokens: (B, S) int32 (or (S,)); position: (B, S, H) or (S, H)."""
    wemb = prep["wemb"]
    _, H = wemb.shape
    S, O, OPAD = prep["S"], prep["O"], prep["OPAD"]
    SH = S * H

    if tokens.ndim == 1:
        tokens = tokens[None]
    B = tokens.shape[0]
    assert tokens.shape[1] == S, "Att requires seq_len == pint"
    if position.ndim == 2:
        position = jnp.broadcast_to(position[None], (B, S, H))

    # Embedding gather + positional add in the wrapper; feed the MXU bf16 activations
    # (halves the dominant activation's HBM/DMA bytes).
    inn = wemb[tokens] + position                      # (B, S, H) f32
    innf = inn.reshape(B, SH).astype(jnp.bfloat16)     # row-major (s major, h minor)

    # Batch tile: make M large for the MXU.  For B >= 16 use a 2-way grid so
    # dimension_semantics=("parallel",) can shard the tiles across v7x's 2 TensorCores;
    # otherwise a single full-batch step (no per-step pipeline overhead).
    if batch_tile is not None:
        BT = batch_tile
    elif B >= 16 and B % 16 == 0:
        BT = B // 2
    else:
        BT = B
    if B % BT != 0 or (BT != B and BT % 8 != 0):
        BT = B                                         # safe fallback: one full-batch step
    grid = (B // BT,)

    kernel = _make_kernel(S, H)

    args = (innf,
            prep["w1f"], prep["b1"],
            prep["woa"], prep["wob"], prep["bo"],
            prep["w2f"], prep["b2"],
            prep["wdt"], prep["bd"])

    in_specs = [
        pl.BlockSpec((BT, SH), lambda b: (b, 0)),      # innf: per-batch-tile
        pl.BlockSpec((SH, H), lambda b: (0, 0)),       # w1f  (resident)
        pl.BlockSpec((1, H), lambda b: (0, 0)),        # b1
        pl.BlockSpec((H, H), lambda b: (0, 0)),        # woa  (compact mix projection)
        pl.BlockSpec((H, H), lambda b: (0, 0)),        # wob  (compact inn projection)
        pl.BlockSpec((1, H), lambda b: (0, 0)),        # bo
        pl.BlockSpec((SH, H), lambda b: (0, 0)),       # w2f
        pl.BlockSpec((1, H), lambda b: (0, 0)),        # b2
        pl.BlockSpec((H, OPAD), lambda b: (0, 0)),     # wdt (lane-padded)
        pl.BlockSpec((1, OPAD), lambda b: (0, 0)),     # bd  (lane-padded)
    ]
    out_specs = pl.BlockSpec((BT, OPAD), lambda b: (b, 0))

    # Compact (non-redundant) FLOP count: conv1 + mix + per-pos inn proj + conv2 + decoder.
    flops = int(B * (2 * SH * H + 2 * H * H + 2 * SH * H + 2 * SH * H + 2 * H * OPAD))
    bytes_accessed = int(sum(a.size * a.dtype.itemsize for a in args) + B * OPAD * 4)

    out_padded = pl.pallas_call(
        kernel,
        out_shape=jax.ShapeDtypeStruct((B, OPAD), jnp.float32),
        grid=grid,
        in_specs=in_specs,
        out_specs=out_specs,
        compiler_params=pltpu.CompilerParams(
            dimension_semantics=("parallel",),
            vmem_limit_bytes=32 * 1024 * 1024),
        cost_estimate=pl.CostEstimate(flops=flops,
                                      transcendentals=int(B * S * H),
                                      bytes_accessed=bytes_accessed),
    )(*args)
    return out_padded[:, :O]


# ----------------------------------------------------------------------------- reference
def att_reference(tokens, position, params):
    """Pure-JAX mirror of the PyTorch forward for ONE sequence (literal formulation)."""
    wemb = params["wemb"]
    w1, b1 = params["w1"], params["b1"]
    w2, b2 = params["w2"], params["b2"]
    wo, bo = params["wo"], params["bo"]
    wd, bd = params["wd"], params["bd"]
    H = wemb.shape[1]

    enc = wemb[tokens]
    inn = enc + position                                                # (S, H)
    oc1 = jax.nn.relu(w1[:, 0].reshape(H, -1) @ inn.reshape(-1) + b1)   # (H,)
    scores = inn @ oc1                                                  # (S,)
    attn = jax.nn.softmax(scores[:, None], axis=1)                      # (S,1) == ones
    mix = attn * oc1[None, :]                                           # (S, H)
    combined = jnp.concatenate([mix, inn], axis=1)                      # (S, 2H)
    oa1 = jnp.tanh(combined @ wo.T + bo)                                # (S, H)
    oc2 = jax.nn.relu(w2[:, 0].reshape(H, -1) @ oa1.reshape(-1) + b2)   # (H,)
    return (oc2 @ wd.T + bd)[None, :]                                   # (1, O)


# ----------------------------------------------------------------------------- main
if __name__ == "__main__":
    # Module-consistent sizes: vocab=16, hidden=32, pint=seq=8, out=16.
    # Batch of independent sequences large enough to fill the MXU (BT=128, grid=(2,)).
    V, H, P, O = 16, 32, 8, 16
    S = P
    B = 256

    key = jax.random.PRNGKey(0)
    ks = jax.random.split(key, 12)
    params = {
        "wemb": jax.random.normal(ks[0], (V, H), jnp.float32) * 0.1,
        "w1":   jax.random.normal(ks[1], (H, 1, P, H), jnp.float32) * 0.1,
        "b1":   jax.random.normal(ks[2], (H,), jnp.float32) * 0.1,
        "w2":   jax.random.normal(ks[3], (H, 1, P, H), jnp.float32) * 0.1,
        "b2":   jax.random.normal(ks[4], (H,), jnp.float32) * 0.1,
        "wo":   jax.random.normal(ks[5], (H, 2 * H), jnp.float32) * 0.1,
        "bo":   jax.random.normal(ks[6], (H,), jnp.float32) * 0.1,
        "wd":   jax.random.normal(ks[7], (O, H), jnp.float32) * 0.1,
        "bd":   jax.random.normal(ks[8], (O,), jnp.float32) * 0.1,
    }
    tokens = jax.random.randint(ks[9], (B, S), 0, V, dtype=jnp.int32)
    position = jax.random.normal(ks[10], (B, S, H), jnp.float32) * 0.1

    prep = prepare_params(params)              # one-time weight re-layout / bf16 cast

    out = jax.block_until_ready(att_forward(tokens, position, prep))
    assert out.shape == (B, O)

    # f32 reference; tolerance loosened for bf16 MXU operands (accumulation stays f32).
    ref = jax.vmap(lambda t, p: att_reference(t, p, params)[0])(tokens, position)
    max_err = float(jnp.max(jnp.abs(out - ref)))
    assert jnp.allclose(out, ref, atol=2e-2, rtol=2e-2), max_err

    # Single-sequence path (module-literal call shape): BT == B == 1, grid=(1,).
    out1 = jax.block_until_ready(att_forward(tokens[0], position[0], prep))
    assert jnp.allclose(out1, att_reference(tokens[0], position[0], params),
                        atol=2e-2, rtol=2e-2)

    print("KERNEL_OK")
</pallas_src>

<mosaic_0001>
module attributes {stable_mosaic.version = 11 : i64} {
  func.func @att_kernel(%arg0: i32, %arg1: memref<128x256xbf16, #tpu.memory_space<vmem>>, %arg2: memref<256x32xbf16, #tpu.memory_space<vmem>>, %arg3: memref<1x32xf32, #tpu.memory_space<vmem>>, %arg4: memref<32x32xbf16, #tpu.memory_space<vmem>>, %arg5: memref<32x32xbf16, #tpu.memory_space<vmem>>, %arg6: memref<1x32xf32, #tpu.memory_space<vmem>>, %arg7: memref<256x32xbf16, #tpu.memory_space<vmem>>, %arg8: memref<1x32xf32, #tpu.memory_space<vmem>>, %arg9: memref<32x128xbf16, #tpu.memory_space<vmem>>, %arg10: memref<1x128xf32, #tpu.memory_space<vmem>>, %arg11: memref<128x128xf32, #tpu.memory_space<vmem>>) attributes {dimension_semantics = [#tpu.dimension_semantics<parallel>], iteration_bounds = array<i64: 2>, scalar_prefetch = 0 : i64, scratch_operands = 0 : i64, tpu.core_type = #tpu.core_type<tc>, window_params = [{transform_indices = @transform_0, window_bounds = array<i64: 128, 256>}, {pipeline_mode = #tpu.pipeline_mode<synchronous>, transform_indices = @transform_1, window_bounds = array<i64: 256, 32>}, {pipeline_mode = #tpu.pipeline_mode<synchronous>, transform_indices = @transform_2, window_bounds = array<i64: 1, 32>}, {pipeline_mode = #tpu.pipeline_mode<synchronous>, transform_indices = @transform_3, window_bounds = array<i64: 32, 32>}, {pipeline_mode = #tpu.pipeline_mode<synchronous>, transform_indices = @transform_4, window_bounds = array<i64: 32, 32>}, {pipeline_mode = #tpu.pipeline_mode<synchronous>, transform_indices = @transform_5, window_bounds = array<i64: 1, 32>}, {pipeline_mode = #tpu.pipeline_mode<synchronous>, transform_indices = @transform_6, window_bounds = array<i64: 256, 32>}, {pipeline_mode = #tpu.pipeline_mode<synchronous>, transform_indices = @transform_7, window_bounds = array<i64: 1, 32>}, {pipeline_mode = #tpu.pipeline_mode<synchronous>, transform_indices = @transform_8, window_bounds = array<i64: 32, 128>}, {pipeline_mode = #tpu.pipeline_mode<synchronous>, transform_indices = @transform_9, window_bounds = array<i64: 1, 128>}, {transform_indices = @transform_10, window_bounds = array<i64: 128, 128>}]} {
    %c0 = arith.constant 0 : index
    %c0_0 = arith.constant 0 : index
    %0 = vector.load %arg1[%c0, %c0_0] : memref<128x256xbf16, #tpu.memory_space<vmem>>, vector<128x256xbf16>
    %c0_1 = arith.constant 0 : index
    %c0_2 = arith.constant 0 : index
    %1 = vector.load %arg2[%c0_1, %c0_2] : memref<256x32xbf16, #tpu.memory_space<vmem>>, vector<256x32xbf16>
    %cst = arith.constant dense<0.000000e+00> : vector<128x32xf32>
    %2 = tpu.matmul %0, %1, %cst {dimension_numbers = #tpu.dot_dimension_numbers<[1], [0], [0], [1], [0, 0, 1, 1], [], []>} : vector<128x256xbf16>, vector<256x32xbf16>, vector<128x32xf32> -> vector<128x32xf32>
    %c0_3 = arith.constant 0 : index
    %c0_4 = arith.constant 0 : index
    %3 = vector.load %arg3[%c0_3, %c0_4] : memref<1x32xf32, #tpu.memory_space<vmem>>, vector<1x32xf32>
    %4 = vector.broadcast %3 : vector<1x32xf32> to vector<128x32xf32>
    %5 = arith.addf %2, %4 : vector<128x32xf32>
    %cst_5 = arith.constant 0.000000e+00 : f32
    %6 = vector.broadcast %cst_5 : f32 to vector<128x32xf32>
    %7 = arith.maximumf %5, %6 : vector<128x32xf32>
    %8 = arith.truncf %7 : vector<128x32xf32> to vector<128x32xbf16>
    %c0_6 = arith.constant 0 : index
    %c0_7 = arith.constant 0 : index
    %9 = vector.load %arg4[%c0_6, %c0_7] : memref<32x32xbf16, #tpu.memory_space<vmem>>, vector<32x32xbf16>
    %cst_8 = arith.constant dense<0.000000e+00> : vector<128x32xf32>
    %10 = tpu.matmul %8, %9, %cst_8 {dimension_numbers = #tpu.dot_dimension_numbers<[1], [0], [0], [1], [0, 0, 1, 1], [], []>} : vector<128x32xbf16>, vector<32x32xbf16>, vector<128x32xf32> -> vector<128x32xf32>
    %c0_9 = arith.constant 0 : index
    %c0_10 = arith.constant 0 : index
    %11 = vector.load %arg6[%c0_9, %c0_10] : memref<1x32xf32, #tpu.memory_space<vmem>>, vector<1x32xf32>
    %12 = vector.broadcast %11 : vector<1x32xf32> to vector<128x32xf32>
    %13 = arith.addf %10, %12 : vector<128x32xf32>
    %c0_11 = arith.constant 0 : index
    %c0_12 = arith.constant 0 : index
    %14 = vector.load %arg5[%c0_11, %c0_12] : memref<32x32xbf16, #tpu.memory_space<vmem>>, vector<32x32xbf16>
    %15 = vector.extract_strided_slice %0 {offsets = [0, 0], sizes = [128, 32], strides = [1, 1]} : vector<128x256xbf16> to vector<128x32xbf16>
    %cst_13 = arith.constant dense<0.000000e+00> : vector<128x32xf32>
    %16 = tpu.matmul %15, %14, %cst_13 {dimension_numbers = #tpu.dot_dimension_numbers<[1], [0], [0], [1], [0, 0, 1, 1], [], []>} : vector<128x32xbf16>, vector<32x32xbf16>, vector<128x32xf32> -> vector<128x32xf32>
    %17 = arith.addf %16, %13 : vector<128x32xf32>
    %18 = math.tanh %17 : vector<128x32xf32>
    %19 = arith.truncf %18 : vector<128x32xf32> to vector<128x32xbf16>
    %c0_14 = arith.constant 0 : index
    %c0_15 = arith.constant 0 : index
    %20 = vector.load %arg7[%c0_14, %c0_15] : memref<256x32xbf16, #tpu.memory_space<vmem>>, vector<32x32xbf16>
    %cst_16 = arith.constant dense<0.000000e+00> : vector<128x32xf32>
    %21 = tpu.matmul %19, %20, %cst_16 {dimension_numbers = #tpu.dot_dimension_numbers<[1], [0], [0], [1], [0, 0, 1, 1], [], []>} : vector<128x32xbf16>, vector<32x32xbf16>, vector<128x32xf32> -> vector<128x32xf32>
    %22 = vector.extract_strided_slice %0 {offsets = [0, 32], sizes = [128, 32], strides = [1, 1]} : vector<128x256xbf16> to vector<128x32xbf16>
    %cst_17 = arith.constant dense<0.000000e+00> : vector<128x32xf32>
    %23 = tpu.matmul %22, %14, %cst_17 {dimension_numbers = #tpu.dot_dimension_numbers<[1], [0], [0], [1], [0, 0, 1, 1], [], []>} : vector<128x32xbf16>, vector<32x32xbf16>, vector<128x32xf32> -> vector<128x32xf32>
    %24 = arith.addf %23, %13 : vector<128x32xf32>
    %25 = math.tanh %24 : vector<128x32xf32>
    %26 = arith.truncf %25 : vector<128x32xf32> to vector<128x32xbf16>
    %c32 = arith.constant 32 : index
    %c0_18 = arith.constant 0 : index
    %27 = vector.load %arg7[%c32, %c0_18] : memref<256x32xbf16, #tpu.memory_space<vmem>>, vector<32x32xbf16>
    %cst_19 = arith.constant dense<0.000000e+00> : vector<128x32xf32>
    %28 = tpu.matmul %26, %27, %cst_19 {dimension_numbers = #tpu.dot_dimension_numbers<[1], [0], [0], [1], [0, 0, 1, 1], [], []>} : vector<128x32xbf16>, vector<32x32xbf16>, vector<128x32xf32> -> vector<128x32xf32>
    %29 = arith.addf %21, %28 : vector<128x32xf32>
    %30 = vector.extract_strided_slice %0 {offsets = [0, 64], sizes = [128, 32], strides = [1, 1]} : vector<128x256xbf16> to vector<128x32xbf16>
    %cst_20 = arith.constant dense<0.000000e+00> : vector<128x32xf32>
    %31 = tpu.matmul %30, %14, %cst_20 {dimension_numbers = #tpu.dot_dimension_numbers<[1], [0], [0], [1], [0, 0, 1, 1], [], []>} : vector<128x32xbf16>, vector<32x32xbf16>, vector<128x32xf32> -> vector<128x32xf32>
    %32 = arith.addf %31, %13 : vector<128x32xf32>
    %33 = math.tanh %32 : vector<128x32xf32>
    %34 = arith.truncf %33 : vector<128x32xf32> to vector<128x32xbf16>
    %c64 = arith.constant 64 : index
    %c0_21 = arith.constant 0 : index
    %35 = vector.load %arg7[%c64, %c0_21] : memref<256x32xbf16, #tpu.memory_space<vmem>>, vector<32x32xbf16>
    %cst_22 = arith.constant dense<0.000000e+00> : vector<128x32xf32>
    %36 = tpu.matmul %34, %35, %cst_22 {dimension_numbers = #tpu.dot_dimension_numbers<[1], [0], [0], [1], [0, 0, 1, 1], [], []>} : vector<128x32xbf16>, vector<32x32xbf16>, vector<128x32xf32> -> vector<128x32xf32>
    %37 = arith.addf %29, %36 : vector<128x32xf32>
    %38 = vector.extract_strided_slice %0 {offsets = [0, 96], sizes = [128, 32], strides = [1, 1]} : vector<128x256xbf16> to vector<128x32xbf16>
    %cst_23 = arith.constant dense<0.000000e+00> : vector<128x32xf32>
    %39 = tpu.matmul %38, %14, %cst_23 {dimension_numbers = #tpu.dot_dimension_numbers<[1], [0], [0], [1], [0, 0, 1, 1], [], []>} : vector<128x32xbf16>, vector<32x32xbf16>, vector<128x32xf32> -> vector<128x32xf32>
    %40 = arith.addf %39, %13 : vector<128x32xf32>
    %41 = math.tanh %40 : vector<128x32xf32>
    %42 = arith.truncf %41 : vector<128x32xf32> to vector<128x32xbf16>
    %c96 = arith.constant 96 : index
    %c0_24 = arith.constant 0 : index
    %43 = vector.load %arg7[%c96, %c0_24] : memref<256x32xbf16, #tpu.memory_space<vmem>>, vector<32x32xbf16>
    %cst_25 = arith.constant dense<0.000000e+00> : vector<128x32xf32>
    %44 = tpu.matmul %42, %43, %cst_25 {dimension_numbers = #tpu.dot_dimension_numbers<[1], [0], [0], [1], [0, 0, 1, 1], [], []>} : vector<128x32xbf16>, vector<32x32xbf16>, vector<128x32xf32> -> vector<128x32xf32>
    %45 = arith.addf %37, %44 : vector<128x32xf32>
    %46 = vector.extract_strided_slice %0 {offsets = [0, 128], sizes = [128, 32], strides = [1, 1]} : vector<128x256xbf16> to vector<128x32xbf16>
    %cst_26 = arith.constant dense<0.000000e+00> : vector<128x32xf32>
    %47 = tpu.matmul %46, %14, %cst_26 {dimension_numbers = #tpu.dot_dimension_numbers<[1], [0], [0], [1], [0, 0, 1, 1], [], []>} : vector<128x32xbf16>, vector<32x32xbf16>, vector<128x32xf32> -> vector<128x32xf32>
    %48 = arith.addf %47, %13 : vector<128x32xf32>
    %49 = math.tanh %48 : vector<128x32xf32>
    %50 = arith.truncf %49 : vector<128x32xf32> to vector<128x32xbf16>
    %c128 = arith.constant 128 : index
    %c0_27 = arith.constant 0 : index
    %51 = vector.load %arg7[%c128, %c0_27] : memref<256x32xbf16, #tpu.memory_space<vmem>>, vector<32x32xbf16>
    %cst_28 = arith.constant dense<0.000000e+00> : vector<128x32xf32>
    %52 = tpu.matmul %50, %51, %cst_28 {dimension_numbers = #tpu.dot_dimension_numbers<[1], [0], [0], [1], [0, 0, 1, 1], [], []>} : vector<128x32xbf16>, vector<32x32xbf16>, vector<128x32xf32> -> vector<128x32xf32>
    %53 = arith.addf %45, %52 : vector<128x32xf32>
    %54 = vector.extract_strided_slice %0 {offsets = [0, 160], sizes = [128, 32], strides = [1, 1]} : vector<128x256xbf16> to vector<128x32xbf16>
    %cst_29 = arith.constant dense<0.000000e+00> : vector<128x32xf32>
    %55 = tpu.matmul %54, %14, %cst_29 {dimension_numbers = #tpu.dot_dimension_numbers<[1], [0], [0], [1], [0, 0, 1, 1], [], []>} : vector<128x32xbf16>, vector<32x32xbf16>, vector<128x32xf32> -> vector<128x32xf32>
    %56 = arith.addf %55, %13 : vector<128x32xf32>
    %57 = math.tanh %56 : vector<128x32xf32>
    %58 = arith.truncf %57 : vector<128x32xf32> to vector<128x32xbf16>
    %c160 = arith.constant 160 : index
    %c0_30 = arith.constant 0 : index
    %59 = vector.load %arg7[%c160, %c0_30] : memref<256x32xbf16, #tpu.memory_space<vmem>>, vector<32x32xbf16>
    %cst_31 = arith.constant dense<0.000000e+00> : vector<128x32xf32>
    %60 = tpu.matmul %58, %59, %cst_31 {dimension_numbers = #tpu.dot_dimension_numbers<[1], [0], [0], [1], [0, 0, 1, 1], [], []>} : vector<128x32xbf16>, vector<32x32xbf16>, vector<128x32xf32> -> vector<128x32xf32>
    %61 = arith.addf %53, %60 : vector<128x32xf32>
    %62 = vector.extract_strided_slice %0 {offsets = [0, 192], sizes = [128, 32], strides = [1, 1]} : vector<128x256xbf16> to vector<128x32xbf16>
    %cst_32 = arith.constant dense<0.000000e+00> : vector<128x32xf32>
    %63 = tpu.matmul %62, %14, %cst_32 {dimension_numbers = #tpu.dot_dimension_numbers<[1], [0], [0], [1], [0, 0, 1, 1], [], []>} : vector<128x32xbf16>, vector<32x32xbf16>, vector<128x32xf32> -> vector<128x32xf32>
    %64 = arith.addf %63, %13 : vector<128x32xf32>
    %65 = math.tanh %64 : vector<128x32xf32>
    %66 = arith.truncf %65 : vector<128x32xf32> to vector<128x32xbf16>
    %c192 = arith.constant 192 : index
    %c0_33 = arith.constant 0 : index
    %67 = vector.load %arg7[%c192, %c0_33] : memref<256x32xbf16, #tpu.memory_space<vmem>>, vector<32x32xbf16>
    %cst_34 = arith.constant dense<0.000000e+00> : vector<128x32xf32>
    %68 = tpu.matmul %66, %67, %cst_34 {dimension_numbers = #tpu.dot_dimension_numbers<[1], [0], [0], [1], [0, 0, 1, 1], [], []>} : vector<128x32xbf16>, vector<32x32xbf16>, vector<128x32xf32> -> vector<128x32xf32>
    %69 = arith.addf %61, %68 : vector<128x32xf32>
    %70 = vector.extract_strided_slice %0 {offsets = [0, 224], sizes = [128, 32], strides = [1, 1]} : vector<128x256xbf16> to vector<128x32xbf16>
    %cst_35 = arith.constant dense<0.000000e+00> : vector<128x32xf32>
    %71 = tpu.matmul %70, %14, %cst_35 {dimension_numbers = #tpu.dot_dimension_numbers<[1], [0], [0], [1], [0, 0, 1, 1], [], []>} : vector<128x32xbf16>, vector<32x32xbf16>, vector<128x32xf32> -> vector<128x32xf32>
    %72 = arith.addf %71, %13 : vector<128x32xf32>
    %73 = math.tanh %72 : vector<128x32xf32>
    %74 = arith.truncf %73 : vector<128x32xf32> to vector<128x32xbf16>
    %c224 = arith.constant 224 : index
    %c0_36 = arith.constant 0 : index
    %75 = vector.load %arg7[%c224, %c0_36] : memref<256x32xbf16, #tpu.memory_space<vmem>>, vector<32x32xbf16>
    %cst_37 = arith.constant dense<0.000000e+00> : vector<128x32xf32>
    %76 = tpu.matmul %74, %75, %cst_37 {dimension_numbers = #tpu.dot_dimension_numbers<[1], [0], [0], [1], [0, 0, 1, 1], [], []>} : vector<128x32xbf16>, vector<32x32xbf16>, vector<128x32xf32> -> vector<128x32xf32>
    %77 = arith.addf %69, %76 : vector<128x32xf32>
    %c0_38 = arith.constant 0 : index
    %c0_39 = arith.constant 0 : index
    %78 = vector.load %arg8[%c0_38, %c0_39] : memref<1x32xf32, #tpu.memory_space<vmem>>, vector<1x32xf32>
    %79 = vector.broadcast %78 : vector<1x32xf32> to vector<128x32xf32>
    %80 = arith.addf %77, %79 : vector<128x32xf32>
    %cst_40 = arith.constant 0.000000e+00 : f32
    %81 = vector.broadcast %cst_40 : f32 to vector<128x32xf32>
    %82 = arith.maximumf %80, %81 : vector<128x32xf32>
    %83 = arith.truncf %82 : vector<128x32xf32> to vector<128x32xbf16>
    %c0_41 = arith.constant 0 : index
    %c0_42 = arith.constant 0 : index
    %84 = vector.load %arg9[%c0_41, %c0_42] : memref<32x128xbf16, #tpu.memory_space<vmem>>, vector<32x128xbf16>
    %cst_43 = arith.constant dense<0.000000e+00> : vector<128x128xf32>
    %85 = tpu.matmul %83, %84, %cst_43 {dimension_numbers = #tpu.dot_dimension_numbers<[1], [0], [0], [1], [0, 0, 1, 1], [], []>} : vector<128x32xbf16>, vector<32x128xbf16>, vector<128x128xf32> -> vector<128x128xf32>
    %c0_44 = arith.constant 0 : index
    %c0_45 = arith.constant 0 : index
    %86 = vector.load %arg10[%c0_44, %c0_45] : memref<1x128xf32, #tpu.memory_space<vmem>>, vector<1x128xf32>
    %87 = vector.broadcast %86 : vector<1x128xf32> to vector<128x128xf32>
    %88 = arith.addf %85, %87 : vector<128x128xf32>
    %c0_46 = arith.constant 0 : index
    %c0_47 = arith.constant 0 : index
    %89 = vector.load %arg11[%c0_46, %c0_47] : memref<128x128xf32, #tpu.memory_space<vmem>>, vector<128x128xf32>
    tpu.vector_store %arg11[%c0_46, %c0_47], %88 {strides = array<i32>} : memref<128x128xf32, #tpu.memory_space<vmem>>, vector<128x128xf32>,
    return
  }
  func.func @transform_0(%arg0: i32) -> (i32, i32) {
    %c0_i32 = arith.constant 0 : i32
    %c0_i32_0 = arith.constant 0 : i32
    return %arg0, %c0_i32 : i32, i32
  }
  func.func @transform_1(%arg0: i32) -> (i32, i32) {
    %c0_i32 = arith.constant 0 : i32
    %c0_i32_0 = arith.constant 0 : i32
    %c0_i32_1 = arith.constant 0 : i32
    return %c0_i32, %c0_i32_0 : i32, i32
  }
  func.func @transform_2(%arg0: i32) -> (i32, i32) {
    %c0_i32 = arith.constant 0 : i32
    %c0_i32_0 = arith.constant 0 : i32
    %c0_i32_1 = arith.constant 0 : i32
    return %c0_i32, %c0_i32_0 : i32, i32
  }
  func.func @transform_3(%arg0: i32) -> (i32, i32) {
    %c0_i32 = arith.constant 0 : i32
    %c0_i32_0 = arith.constant 0 : i32
    %c0_i32_1 = arith.constant 0 : i32
    return %c0_i32, %c0_i32_0 : i32, i32
  }
  func.func @transform_4(%arg0: i32) -> (i32, i32) {
    %c0_i32 = arith.constant 0 : i32
    %c0_i32_0 = arith.constant 0 : i32
    %c0_i32_1 = arith.constant 0 : i32
    return %c0_i32, %c0_i32_0 : i32, i32
  }
  func.func @transform_5(%arg0: i32) -> (i32, i32) {
    %c0_i32 = arith.constant 0 : i32
    %c0_i32_0 = arith.constant 0 : i32
    %c0_i32_1 = arith.constant 0 : i32
    return %c0_i32, %c0_i32_0 : i32, i32
  }
  func.func @transform_6(%arg0: i32) -> (i32, i32) {
    %c0_i32 = arith.constant 0 : i32
    %c0_i32_0 = arith.constant 0 : i32
    %c0_i32_1 = arith.constant 0 : i32
    return %c0_i32, %c0_i32_0 : i32, i32
  }
  func.func @transform_7(%arg0: i32) -> (i32, i32) {
    %c0_i32 = arith.constant 0 : i32
    %c0_i32_0 = arith.constant 0 : i32
    %c0_i32_1 = arith.constant 0 : i32
    return %c0_i32, %c0_i32_0 : i32, i32
  }
  func.func @transform_8(%arg0: i32) -> (i32, i32) {
    %c0_i32 = arith.constant 0 : i32
    %c0_i32_0 = arith.constant 0 : i32
    %c0_i32_1 = arith.constant 0 : i32
    return %c0_i32, %c0_i32_0 : i32, i32
  }
  func.func @transform_9(%arg0: i32) -> (i32, i32) {
    %c0_i32 = arith.constant 0 : i32
    %c0_i32_0 = arith.constant 0 : i32
    %c0_i32_1 = arith.constant 0 : i32
    return %c0_i32, %c0_i32_0 : i32, i32
  }
  func.func @transform_10(%arg0: i32) -> (i32, i32) {
    %c0_i32 = arith.constant 0 : i32
    %c0_i32_0 = arith.constant 0 : i32
    return %arg0, %c0_i32 : i32, i32
  }
}

</mosaic_0001>

<bundles_post_ra>
// kernel: tpu_custom_call.1
= control target key start
LH: loop header
LB: loop body
LE: loop exit
PB: predicated region body
PF: predicated region fallthrough
CT: control target
= control target key end

     0   :  { %s4858_s0 = inlined_call_operand.vmem [shape: bf16[256,256], index: 0, kind: input, shape index: {}]   ;;  %s4859_s1 = inlined_call_operand.vmem [shape: bf16[256,32], index: 1, kind: input, shape index: {}]   ;;  %s4860_s2 = inlined_call_operand.vmem [shape: f32[1,32], index: 2, kind: input, shape index: {}]   ;;  %s4861_s3 = inlined_call_operand.vmem [shape: bf16[32,32], index: 3, kind: input, shape index: {}]   ;;  %s4862_s4 = inlined_call_operand.vmem [shape: bf16[32,32], index: 4, kind: input, shape index: {}]   ;;  %s4863_s5 = inlined_call_operand.vmem [shape: f32[1,32], index: 5, kind: input, shape index: {}]   ;;  %s4864_s6 = inlined_call_operand.vmem [shape: bf16[256,32], index: 6, kind: input, shape index: {}]   ;;  %s4865_s7 = inlined_call_operand.vmem [shape: f32[1,32], index: 7, kind: input, shape index: {}]   ;;  %s4866_s8 = inlined_call_operand.hbm [shape: bf16[32,128], index: 8, kind: input, shape index: {}]   ;;  %s4867_s9 = inlined_call_operand.vmem [shape: f32[1,128], index: 9, kind: input, shape index: {}]   ;;  %s4868_s10 = inlined_call_operand.hbm [shape: f32[256,128], index: 10, kind: output, shape index: {}]  }
   0x1   :  { %4869 = sst [smem:[#allocation9_spill]] %s4866_s8 }
   0x2   :  { %15 = vsyncpa [#allocation3], 0 }
   0x3   :  { %16 = vsyncpa [#allocation4], 0 }
   0x4   :  { %18 = vsyncpa [#allocation4 + $0x1], 0  ;;  %s3676_s13 = smov 0   ;;  %s3678_s14 = smov 0  }
   0x5   :  { %s3680_s15 = smov 0   ;;  %s3682_s16 = smov 0  }
   0x6 LB: > { %s3697_s17 = sadd.s32 4294967295, %s3611_s16   ;;  %s2765_s18 = sadd.s32 4294967294, %s3611_s16   ;;  %s3611_s16 = sphi %s3682_s16, %s4888_s16   ;;  %s3607_s15 = sphi %s3680_s15, %s4887_s15   ;;  %s3603_s14 = sphi %s3678_s14, %s4886_s14   ;;  %s3599_s13 = sphi %s3676_s13, %s4885_s13  }
   0x7   : > { %s3701_s19 = sadd.s32 1, %s3611_s16   ;;  %s246_s20 = sadd.s32 1, %s3607_s15 }
   0x8   : > { %s243_s21 = ssub.s32 %s3611_s16, %s3701_s19  ;;  %p256_p0 = scmp.ne.s32.totalorder %s3607_s15, %s3603_s14 }
   0x9   : > { %p244_p1 = scmp.eq.s32.totalorder %s243_s21, 0  ;;  %p257_p2 = scmp.eq.s32.totalorder %s3697_s17, 1 }
   0xa   : > { %p262_p3 = scmp.ne.s32.totalorder %s3603_s14, %s3599_s13  ;;  %p263_p4 = scmp.eq.s32.totalorder %s2765_s18, 1 }
   0xb   : > { %s3712_s22 = scalar_select %p244_p1, %s3607_s15, %s246_s20  }
   0xc   : > { %p3714_p5 = por %p257_p2, %p256_p0  ;;  %p3718_p6 = por %p263_p4, %p262_p3 }
   0xd   : > { %p2766_p7 = scmp.ge.s32.totalorder %s3611_s16, 1  ;;  %p270_p8 = scmp.lt.s32.totalorder %s3611_s16, 3 }
   0xe   : > { %p3210_p9 = scmp.eq.s32.totalorder %s3697_s17, 0  ;;  %s4872_s8 = sld [smem:[#allocation9_spill]] }
   0xf   : > { %p271_p10 = pnand %p2766_p7, %p270_p8  ;;  %s3613_s28 = smov [#allocation2]  }
  0x10   : > { %s304_s29 = sshll.u32 %s3613_s28, 4  ;;  %s3614_s30 = smov 64   ;;  %s305_s29 = int_to_ptr.vmem [resolvable:$true] %s304_s29 }
  0x11   : > { %p3202_p11 = pneg %p271_p10  ;;  %s3615_s11 = smov 4  }
  0x12   : > { %333 = sbr.rel (%p271_p10) target bundleno = 1406 (0x57e), region = 60 }
  0x13   : > { %p3203_p12 = pnand %p3210_p9, %p3202_p11 }
  0x14   : > { %s302_s27 = sshll.u32 %s4872_s8, 4  ;;  %s303_s27 = int_to_ptr.hbm [resolvable:$true] %s302_s27 }
  0x15   : > { %3205 = dma.hbm_to_vmem [thread:$0]  (!%p3203_p12), %s303_s27, 256, %s305_s29, [#allocation3], %s3614_s30, %s3614_s30, %s3615_s11  }
  0x17   : > { %3590 = dma.done.wait (%p3210_p9), [#allocation3], 256  }
  0x18   : > { %3592 = vsyncadd (%p3210_p9), [#allocation3], 4294967040  ;;  %s2772_s12 = sshll.u32 %s3697_s17, 4  ;;  %v3164_v0 = vld [vmem:[%s4859_s1 + $0x38] sm:$0xff]  ;;  %v3163_v2 = vld [vmem:[%s4859_s1 + $0x30] sm:$0xff]  ;;  %s3617_s27 = smov 32  }
  0x19   : > { %p374_p13 = scmp.lt.s32.totalorder %s2772_s12, 31  ;;  %v3172_v1 = vld [vmem:[%s4859_s1 + $0x78] sm:$0xff]  ;;  %610 = vmatpush.bf16.msra.mxu0 %v3164_v0  ;;  %v3171_v3 = vld [vmem:[%s4859_s1 + $0x70] sm:$0xff]  ;;  %v3162_v6 = vld [vmem:[%s4859_s1 + $0x28] sm:$0xff]  ;;  %s3618_s28 = smov 64   ;;  %vm752_vm0 = vcmask 261120  }
  0x1a   : > { %659 = vmatpush.bf16.msra.mxu1 %v3172_v1  ;;  %v3170_v7 = vld [vmem:[%s4859_s1 + $0x68] sm:$0xff]  ;;  %v3161_v12 = vld [vmem:[%s4859_s1 + $0x20] sm:$0xff]  ;;  %v3160_v18 = vld [vmem:[%s4859_s1 + $0x18] sm:$0xff]  ;;  %s3195_s21 = sshll.u32 %s3697_s17, 7 }
  0x1b   : > { %s4890_s12 = smov (!%p374_p13, %s2772_s12), 31  ;;  %v3169_v13 = vld [vmem:[%s4859_s1 + $0x60] sm:$0xff]  ;;  %v3168_v19 = vld [vmem:[%s4859_s1 + $0x58] sm:$0xff]  ;;  %v3159_v24 = vld [vmem:[%s4859_s1 + $0x10] sm:$0xff] }
  0x1c   : > { %s3140_s18 = sshll.u32 %s4890_s12, 3  ;;  %v3167_v25 = vld [vmem:[%s4859_s1 + $0x50] sm:$0xff]  ;;  %v3158_v34 = vld [vmem:[%s4859_s1 + $0x8] sm:$0xff]  ;;  %v3157_v38 = vld [vmem:[%s4859_s1] sm:$0xff] }
  0x1d   : > { %s3750_s8 = scalar_lea.vmem %s4858_s0, %s3140_s18  ;;  %611 = vmatpush.bf16.msra.mxu0 %v3163_v2  ;;  %s3616_s18 = smov 96   ;;  %v3166_v35 = vld [vmem:[%s4859_s1 + $0x48] sm:$0xff]  ;;  %v3165_v39 = vld [vmem:[%s4859_s1 + $0x40] sm:$0xff] }
  0x1e   : > { %v2777_v4 = vld [vmem:[%s3750_s8] sm:$0xf]  ;;  %v3142_v5 = vld [vmem:[%s3750_s8 + $0x4] sm:$0xf0]  ;;  %660 = vmatpush.bf16.msra.mxu1 %v3171_v3  ;;  %v2785_v14 = vld [vmem:[%s3750_s8 + $0x10] sm:$0xf] }
  0x1f   : > { %v3760_v8 = vor.u32 %v3142_v5, %v2777_v4  ;;  %v2793_v9 = vld [vmem:[%s3750_s8 + $0x20] sm:$0xf]  ;;  %v3146_v10 = vld [vmem:[%s3750_s8 + $0x24] sm:$0xf0]  ;;  %v3144_v15 = vld [vmem:[%s3750_s8 + $0x14] sm:$0xf0] }
  0x20   : > { %v3764_v11 = vor.u32 %v3146_v10, %v2793_v9  ;;  %v2801_v16 = vld [vmem:[%s3750_s8 + $0x30] sm:$0xf]  ;;  %v3148_v17 = vld [vmem:[%s3750_s8 + $0x34] sm:$0xf0]  ;;  %v3786_v20 = vor.u32 %v3144_v15, %v2785_v14  ;;  %v2809_v22 = vld [vmem:[%s3750_s8 + $0x40] sm:$0xf] }
  0x21   : > { %943 = vrot.lane.b32.xlu0 %v3760_v8, %s3616_s18  ;;  %612 = vmatpush.bf16.msra.mxu0 %v3162_v6  ;;  %v3788_v21 = vor.u32 %v3148_v17, %v2801_v16  ;;  %v3150_v23 = vld [vmem:[%s3750_s8 + $0x44] sm:$0xf0]  ;;  %v2825_v27 = vld [vmem:[%s3750_s8 + $0x60] sm:$0xf]  ;;  %v2833_v29 = vld [vmem:[%s3750_s8 + $0x70] sm:$0xf] }
  0x22   : > { %661 = vmatpush.bf16.msra.mxu1 %v3170_v7  ;;  %947 = vrot.lane.b32.xlu1 %v3764_v11, %s3616_s18  ;;  %v3800_v26 = vor.u32 %v3150_v23, %v2809_v22  ;;  %v3154_v28 = vld [vmem:[%s3750_s8 + $0x64] sm:$0xf0]  ;;  %v3156_v30 = vld [vmem:[%s3750_s8 + $0x74] sm:$0xf0]  ;;  %v2817_v32 = vld [vmem:[%s3750_s8 + $0x50] sm:$0xf] }
  0x23   : > { %v3810_v31 = vor.u32 %v3154_v28, %v2825_v27  ;;  %v3152_v33 = vld [vmem:[%s3750_s8 + $0x54] sm:$0xf0]  ;;  %v3820_v36 = vor.u32 %v3156_v30, %v2833_v29  ;;  %v3141_v40 = vld [vmem:[%s3750_s8 + $0x4] sm:$0xf]  ;;  %v2779_v41 = vld [vmem:[%s3750_s8 + $0x8] sm:$0xf0] }
  0x24   : > { %951 = vrot.lane.b32.xlu2 %v3800_v26, %s3616_s18  ;;  %v3822_v37 = vor.u32 %v3152_v33, %v2817_v32  ;;  %v3838_v42 = vor.u32 %v3141_v40, %v2779_v41  ;;  %v3143_v43 = vld [vmem:[%s3750_s8 + $0x14] sm:$0xf]  ;;  %v2787_v44 = vld [vmem:[%s3750_s8 + $0x18] sm:$0xf0]  ;;  %v3145_v46 = vld [vmem:[%s3750_s8 + $0x24] sm:$0xf] }
  0x25   : > { %613 = vmatpush.bf16.msra.mxu0 %v3161_v12  ;;  %v3856_v45 = vor.u32 %v3143_v43, %v2787_v44  ;;  %v2795_v47 = vld [vmem:[%s3750_s8 + $0x28] sm:$0xf0]  ;;  %v3147_v49 = vld [vmem:[%s3750_s8 + $0x34] sm:$0xf]  ;;  %v2803_v50 = vld [vmem:[%s3750_s8 + $0x38] sm:$0xf0] }
  0x26   : > { %662 = vmatpush.bf16.msra.mxu1 %v3169_v13  ;;  %v3874_v48 = vor.u32 %v3145_v46, %v2795_v47  ;;  %v3892_v51 = vor.u32 %v3147_v49, %v2803_v50  ;;  %v3149_v52 = vld [vmem:[%s3750_s8 + $0x44] sm:$0xf]  ;;  %v2811_v53 = vld [vmem:[%s3750_s8 + $0x48] sm:$0xf0]  ;;  %v3151_v55 = vld [vmem:[%s3750_s8 + $0x54] sm:$0xf] }
  0x27   : > { %v3900_v54 = vor.u32 %v3149_v52, %v2811_v53  ;;  %v2819_v56 = vld [vmem:[%s3750_s8 + $0x58] sm:$0xf0]  ;;  %v3153_v58 = vld [vmem:[%s3750_s8 + $0x64] sm:$0xf]  ;;  %v2827_v59 = vld [vmem:[%s3750_s8 + $0x68] sm:$0xf0] }
  0x28   : > { %v3908_v57 = vor.u32 %v3151_v55, %v2819_v56  ;;  %v3914_v60 = vor.u32 %v3153_v58, %v2827_v59  ;;  %v3155_v61 = vld [vmem:[%s3750_s8 + $0x74] sm:$0xf]  ;;  %v2835_v62 = vld [vmem:[%s3750_s8 + $0x78] sm:$0xf0]  ;;  %v3935_v0 = vld [vmem:[%s4862_s4 + $0x8] sm:$0xff]  ;;  %s370_s8 = sand.u32 1, %s3603_s14  }
  0x29   : > { %945 = vrot.lane.b32.xlu0 %v3786_v20, %s3616_s18  ;;  %614 = vmatpush.bf16.msra.mxu0 %v3160_v18  ;;  %v3928_v63 = vor.u32 %v3155_v61, %v2835_v62  ;;  %v3945_v1 = vld [vmem:[%s4862_s4] sm:$0xff]  ;;  %v3174_v2 = vld [vmem:[%s4861_s3 + $0x8] sm:$0xff]  ;;  %s2771_s11 = sshll.u32 %s370_s8, 7  ;;  %s2676_s30 = scalar_lea.sflag [#allocation4], %s370_s8 }
  0x2a   : > { %663 = vmatpush.bf16.msra.mxu1 %v3168_v19  ;;  %949 = vrot.lane.b32.xlu1 %v3788_v21, %s3616_s18  ;;  %v3173_v4 = vld [vmem:[%s4861_s3] sm:$0xff]  ;;  %s4806_s20 = scalar_lea.vmem [#allocation5], %s2771_s11 }
  0x2b   : > { %872 = vmatpush.bf16.msra.mxu3 %v3935_v0  ;;  %783 = vmatpush.bf16.msra.mxu2 %v3174_v2  ;;  %v4005_v13 = vld [vmem:[%s4860_s2] ss:$0 sm:$0xff] }
  0x2c   : > { %953 = vrot.lane.b32.xlu2 %v3822_v37, %s3616_s18 }
  0x2d   : > { %615 = vmatpush.bf16.msra.mxu0 %v3159_v24 }
  0x2e   : > { %664 = vmatpush.bf16.msra.mxu1 %v3167_v25 }
  0x2f   : > { %873 = vmatpush.bf16.msra.mxu3 %v3945_v1  ;;  %784 = vmatpush.bf16.msra.mxu2 %v3173_v4 }
  0x31   : > { %955 = vrot.lane.b32.xlu0 %v3810_v31, %s3616_s18  ;;  %616 = vmatpush.bf16.msra.mxu0 %v3158_v34 }
  0x32   : > { %665 = vmatpush.bf16.msra.mxu1 %v3166_v35  ;;  %957 = vrot.lane.b32.xlu1 %v3820_v36, %s3616_s18 }
  0x33   : > { %2927 = vmatmul.msk.bf16.vlgmr.msra.gmra.mxu3 %vm752_vm0, %v3760_v8  ;;  %989 = vmatpush.bf16.msrb.mxu2 %v3935_v0 }
  0x34   : > { %1230 = vrot.lane.b32.xlu2 %v3760_v8, %s3618_s28 }
  0x35   : > { %617 = vmatpush.bf16.msra.mxu0 %v3157_v38 }
  0x36   : > { %666 = vmatpush.bf16.msra.mxu1 %v3165_v39 }
  0x37   : > { %990 = vmatpush.bf16.msrb.mxu2 %v3945_v1 }
  0x38   : > { %618 = vmatmul.bf16.vlgmr.msra.gmra.mxu0 %v3760_v8 }
  0x39   : > { %1448 = vrot.lane.b32.xlu0 %v3760_v8, %s3617_s27  ;;  %667 = vmatmul.bf16.vlgmr.msra.gmra.mxu1 %v3838_v42 }
  0x3a   : > { %1232 = vrot.lane.b32.xlu1 %v3786_v20, %s3618_s28  ;;  %1276 = vmatpush.bf16.msrb.mxu1 %v3935_v0 }
  0x3c   : > { %1450 = vrot.lane.b32.xlu2 %v3786_v20, %s3617_s27 }
  0x3e   : > { %1277 = vmatpush.bf16.msrb.mxu1 %v3945_v1 }
  0x41   : > { %1234 = vrot.lane.b32.xlu0 %v3764_v11, %s3618_s28 }
  0x42   : > { %1452 = vrot.lane.b32.xlu1 %v3764_v11, %s3617_s27  ;;  %1696 = vmatpush.bf16.msra.mxu1 %v3935_v0 }
  0x43   : > { %2928 = vmatmul.msk.bf16.gmra.mxu3 %vm752_vm0, %v3786_v20 }
  0x44   : > { %1236 = vrot.lane.b32.xlu2 %v3788_v21, %s3618_s28 }
  0x46   : > { %1697 = vmatpush.bf16.msra.mxu1 %v3945_v1 }
  0x48   : > { %623 = vmatmul.bf16.gmra.mxu0 %v3786_v20 }
  0x49   : > { %1454 = vrot.lane.b32.xlu0 %v3788_v21, %s3617_s27  ;;  %672 = vmatmul.bf16.gmra.mxu1 %v3856_v45 }
  0x4a   : > { %1238 = vrot.lane.b32.xlu1 %v3800_v26, %s3618_s28 }
  0x4c   : > { %1456 = vrot.lane.b32.xlu2 %v3800_v26, %s3617_s27 }
  0x51   : > { %1240 = vrot.lane.b32.xlu0 %v3822_v37, %s3618_s28 }
  0x52   : > { %1458 = vrot.lane.b32.xlu1 %v3822_v37, %s3617_s27 }
  0x53   : > { %2929 = vmatmul.msk.bf16.gmra.mxu3 %vm752_vm0, %v3764_v11 }
  0x54   : > { %1242 = vrot.lane.b32.xlu2 %v3810_v31, %s3618_s28 }
  0x58   : > { %628 = vmatmul.bf16.gmra.mxu0 %v3764_v11 }
  0x59   : > { %1460 = vrot.lane.b32.xlu0 %v3810_v31, %s3617_s27  ;;  %677 = vmatmul.bf16.gmra.mxu1 %v3874_v48 }
  0x5a   : > { %1244 = vrot.lane.b32.xlu1 %v3820_v36, %s3618_s28 }
  0x5c   : > { %1462 = vrot.lane.b32.xlu2 %v3820_v36, %s3617_s27 }
  0x61   : > { %1868 = vrot.lane.b32.xlu0 %v3838_v42, %s3616_s18 }
  0x62   : > { %1870 = vrot.lane.b32.xlu1 %v3856_v45, %s3616_s18 }
  0x63   : > { %2930 = vmatmul.msk.bf16.gmra.mxu3 %vm752_vm0, %v3788_v21 }
  0x64   : > { %1872 = vrot.lane.b32.xlu2 %v3874_v48, %s3616_s18 }
  0x68   : > { %633 = vmatmul.bf16.gmra.mxu0 %v3788_v21 }
  0x69   : > { %1874 = vrot.lane.b32.xlu0 %v3892_v51, %s3616_s18  ;;  %682 = vmatmul.bf16.gmra.mxu1 %v3892_v51 }
  0x6a   : > { %1876 = vrot.lane.b32.xlu1 %v3900_v54, %s3616_s18 }
  0x6c   : > { %1878 = vrot.lane.b32.xlu2 %v3908_v57, %s3616_s18 }
  0x71   : > { %1880 = vrot.lane.b32.xlu0 %v3914_v60, %s3616_s18 }
  0x72   : > { %1882 = vrot.lane.b32.xlu1 %v3928_v63, %s3616_s18 }
  0x73   : > { %2931 = vmatmul.msk.bf16.gmra.mxu3 %vm752_vm0, %v3800_v26 }
  0x74   : > { %2086 = vrot.lane.b32.xlu2 %v3838_v42, %s3618_s28 }
  0x78   : > { %638 = vmatmul.bf16.gmra.mxu0 %v3800_v26 }
  0x79   : > { %687 = vmatmul.bf16.gmra.mxu1 %v3900_v54  ;;  %2304 = vrot.lane.b32.xlu0 %v3838_v42, %s3617_s27 }
  0x7a   : > { %2088 = vrot.lane.b32.xlu1 %v3856_v45, %s3618_s28 }
  0x7c   : > { %2306 = vrot.lane.b32.xlu2 %v3856_v45, %s3617_s27 }
  0x7e   : > { %v3973_v3 = vpop.permute.xlu2 %951 }
  0x81   : > { %2090 = vrot.lane.b32.xlu0 %v3874_v48, %s3618_s28 }
  0x82   : > { %2308 = vrot.lane.b32.xlu1 %v3874_v48, %s3617_s27 }
  0x83   : > { %2932 = vmatmul.msk.bf16.gmra.mxu3 %vm752_vm0, %v3822_v37 }
  0x84   : > { %2092 = vrot.lane.b32.xlu2 %v3892_v51, %s3618_s28 }
  0x86   : > { %v3992_v6 = vpop.permute.xlu2 %953 }
  0x88   : > { %643 = vmatmul.bf16.gmra.mxu0 %v3822_v37 }
  0x89   : > { %692 = vmatmul.bf16.gmra.mxu1 %v3908_v57  ;;  %2310 = vrot.lane.b32.xlu0 %v3892_v51, %s3617_s27 }
  0x8a   : > { %2094 = vrot.lane.b32.xlu1 %v3900_v54, %s3618_s28 }
  0x8c   : > { %2312 = vrot.lane.b32.xlu2 %v3900_v54, %s3617_s27 }
  0x8e   : > { %v1231_v9 = vpop.permute.xlu2 %1230 }
  0x91   : > { %2096 = vrot.lane.b32.xlu0 %v3908_v57, %s3618_s28 }
  0x92   : > { %2314 = vrot.lane.b32.xlu1 %v3908_v57, %s3617_s27 }
  0x93   : > { %v3996_v7 = vpop.permute.xlu0 %943  ;;  %2933 = vmatmul.msk.bf16.gmra.mxu3 %vm752_vm0, %v3810_v31 }
  0x94   : > { %2098 = vrot.lane.b32.xlu2 %v3914_v60, %s3618_s28  ;;  %v3985_v5 = vpop.permute.xlu1 %947 }
  0x96   : > { %v4033_v49 = vpop.permute.xlu2 %1450 }
  0x98   : > { %648 = vmatmul.bf16.gmra.mxu0 %v3810_v31 }
  0x99   : > { %697 = vmatmul.bf16.gmra.mxu1 %v3914_v60  ;;  %2316 = vrot.lane.b32.xlu0 %v3914_v60, %s3617_s27 }
  0x9a   : > { %2100 = vrot.lane.b32.xlu1 %v3928_v63, %s3618_s28  ;;  %s2688_s28 = sshll.u32 %s4806_s20, 4  ;;  %s2689_s28 = int_to_ptr.vmem [resolvable:$true] %s2688_s28 }
  0x9b   : > { %v4007_v14 = vpop.permute.xlu0 %945 }
  0x9c   : > { %2318 = vrot.lane.b32.xlu2 %v3928_v63, %s3617_s27  ;;  %v3998_v8 = vpop.permute.xlu1 %949  ;;  %s2687_s27 = scalar_lea.hbm %s4868_s10, %s3195_s21  ;;  %s3565_s21 = scalar_lea.hbm %s4868_s10, 256 }
  0x9d   : > { %s2690_s29 = sshll.u32 %s2687_s27, 4  ;;  %s2691_s29 = int_to_ptr.hbm [resolvable:$true] %s2690_s29 }
  0x9e   : > { %v1237_v62 = vpop.permute.xlu2 %1236  ;;  %s3559_s11 = sshra.s32 %s2691_s29, 4  ;;  %s3560_s11 = int_to_ptr.hbm [resolvable:$true] %s3559_s11 }
  0x9f   : > { %s3561_s17 = scalar_lea.hbm %s3560_s11, 128  ;;  %p3566_p3 = scmp.lt.s32.totalorder %s3560_s11, %s4868_s10 }
  0xa0   : > { %p3562_p0 = scmp.ne.s32.totalorder %s3560_s11, %s3561_s17  ;;  %p3567_p4 = scmp.lt.s32.totalorder %s3565_s21, %s3561_s17 }
  0xa2   : > { %p3563_p1 = pnand %p3562_p0, %p3714_p5  ;;  %p3568_p7 = por %p3567_p4, %p3566_p3 }
  0xa3   : > { %v4018_v23 = vpop.permute.xlu0 %955  ;;  %2934 = vmatmul.msk.bf16.gmra.mxu3 %vm752_vm0, %v3820_v36 }
  0xa4   : > { %v4014_v16 = vpop.permute.xlu1 %957  ;;  %p3564_p2 = pneg %p3563_p1 }
  0xa6   : > { %p3569_p8 = pnand %p3568_p7, %p3564_p2 }
  0xa8   : > { %653 = vmatmul.bf16.gmra.mxu0 %v3820_v36 }
  0xa9   : > { %702 = vmatmul.bf16.gmra.mxu1 %v3928_v63 }
  0xab   : > { %v4025_v32 = vpop.permute.xlu0 %1448 }
  0xac   : > { %v1233_v11 = vpop.permute.xlu1 %1232 }
  0xb3   : > { %v1235_v44 = vpop.permute.xlu0 %1234 }
  0xb5   : > { %v619_v10 = vpop.f32.mrf.mxu0 }
  0xb6   : > { %v668_v12 = vpop.f32.mrf.mxu1  ;;  %v620_v15 = vadd.f32 %v4005_v13, %v619_v10 }
  0xb8   : > { %v669_v19 = vadd.f32 %v668_v12, %v620_v15 }
  0xb9   : > { %2975 = vmatmul.msk.bf16.vlgmr.msrb.gmra.mxu1 %vm752_vm0, %v1231_v9  ;;  %v4041_v9 = vpop.permute.xlu1 %1452 }
  0xba   : > { %2132 = vmatpush.bf16.msrb.mxu1 %v3935_v0  ;;  %v708_v24 = vmax.f32 %v669_v19, 0.0 }
  0xbd   : > { %v621_v17 = vpop.f32.mrf.mxu0 }
  0xbe   : > { %v670_v18 = vpop.f32.mrf.mxu1  ;;  %2133 = vmatpush.bf16.msrb.mxu1 %v3945_v1  ;;  %v622_v20 = vadd.f32 %v4005_v13, %v621_v17 }
  0xc0   : > { %v671_v22 = vadd.f32 %v670_v18, %v622_v20 }
  0xc2   : > { %v709_v25 = vmax.f32 %v671_v22, 0.0 }
  0xc4   : > { %v724_v27 = vpack.c.bf16 %v709_v25, %v708_v24  ;;  %v1239_v24 = vpop.permute.xlu1 %1238 }
  0xc5   : > { %v624_v28 = vpop.f32.mrf.mxu0 }
  0xc6   : > { %v673_v29 = vpop.f32.mrf.mxu1  ;;  %2911 = vmatmul.msk.bf16.vlgmr.msra.gmra.mxu2 %vm752_vm0, %v724_v27  ;;  %v625_v30 = vadd.f32 %v4005_v13, %v624_v28 }
  0xc8   : > { %v674_v35 = vadd.f32 %v673_v29, %v625_v30 }
  0xc9   : > { %2976 = vmatmul.msk.bf16.gmra.mxu1 %vm752_vm0, %v1233_v11  ;;  %v4049_v11 = vpop.permute.xlu0 %1454 }
  0xca   : > { %v710_v40 = vmax.f32 %v674_v35, 0.0 }
  0xcd   : > { %v626_v33 = vpop.f32.mrf.mxu0 }
  0xce   : > { %v675_v34 = vpop.f32.mrf.mxu1  ;;  %v627_v38 = vadd.f32 %v4005_v13, %v626_v33 }
  0xd0   : > { %v676_v39 = vadd.f32 %v675_v34, %v627_v38 }
  0xd2   : > { %v711_v41 = vmax.f32 %v676_v39, 0.0 }
  0xd4   : > { %v725_v43 = vpack.c.bf16 %v711_v41, %v710_v40  ;;  %v1241_v40 = vpop.permute.xlu0 %1240 }
  0xd5   : > { %v629_v46 = vpop.f32.mrf.mxu0 }
  0xd6   : > { %v678_v47 = vpop.f32.mrf.mxu1  ;;  %2912 = vmatmul.msk.bf16.gmra.mxu2 %vm752_vm0, %v725_v43  ;;  %v630_v21 = vadd.f32 %v4005_v13, %v629_v46 }
  0xd8   : > { %v679_v53 = vadd.f32 %v678_v47, %v630_v21 }
  0xd9   : > { %2977 = vmatmul.msk.bf16.gmra.mxu1 %vm752_vm0, %v1235_v44  ;;  %v4057_v44 = vpop.permute.xlu2 %1456 }
  0xda   : > { %v712_v58 = vmax.f32 %v679_v53, 0.0 }
  0xdd   : > { %v631_v50 = vpop.f32.mrf.mxu0 }
  0xde   : > { %v680_v52 = vpop.f32.mrf.mxu1  ;;  %v632_v55 = vadd.f32 %v4005_v13, %v631_v50 }
  0xe0   : > { %v681_v56 = vadd.f32 %v680_v52, %v632_v55 }
  0xe2   : > { %v713_v59 = vmax.f32 %v681_v56, 0.0 }
  0xe4   : > { %v726_v61 = vpack.c.bf16 %v713_v59, %v712_v58  ;;  %v1243_v58 = vpop.permute.xlu2 %1242 }
  0xe5   : > { %v634_v2 = vpop.f32.mrf.mxu0 }
  0xe6   : > { %v683_v4 = vpop.f32.mrf.mxu1  ;;  %2913 = vmatmul.msk.bf16.gmra.mxu2 %vm752_vm0, %v726_v61  ;;  %v635_v26 = vadd.f32 %v4005_v13, %v634_v2 }
  0xe8   : > { %v684_v15 = vadd.f32 %v683_v4, %v635_v26 }
  0xe9   : > { %2978 = vmatmul.msk.bf16.gmra.mxu1 %vm752_vm0, %v1237_v62  ;;  %v4063_v62 = vpop.permute.xlu1 %1458 }
  0xea   : > { %v714_v19 = vmax.f32 %v684_v15, 0.0 }
  0xed   : > { %v636_v10 = vpop.f32.mrf.mxu0 }
  0xee   : > { %v685_v12 = vpop.f32.mrf.mxu1  ;;  %v637_v17 = vadd.f32 %v4005_v13, %v636_v10 }
  0xf0   : > { %v686_v18 = vadd.f32 %v685_v12, %v637_v17 }
  0xf2   : > { %v715_v20 = vmax.f32 %v686_v18, 0.0 }
  0xf4   : > { %v727_v22 = vpack.c.bf16 %v715_v20, %v714_v19  ;;  %v1245_v19 = vpop.permute.xlu1 %1244 }
  0xf5   : > { %v639_v25 = vpop.f32.mrf.mxu0 }
  0xf6   : > { %v688_v27 = vpop.f32.mrf.mxu1  ;;  %2914 = vmatmul.msk.bf16.gmra.mxu2 %vm752_vm0, %v727_v22  ;;  %v640_v37 = vadd.f32 %v4005_v13, %v639_v25  ;;  %v875_v25 = vpop.f32.mrf.mxu3 }
  0xf8   : > { %v689_v30 = vadd.f32 %v688_v27, %v640_v37 }
  0xf9   : > { %2979 = vmatmul.msk.bf16.gmra.mxu1 %vm752_vm0, %v1239_v24 }
  0xfa   : > { %v716_v35 = vmax.f32 %v689_v30, 0.0 }
  0xfd   : > { %v641_v28 = vpop.f32.mrf.mxu0 }
  0xfe   : > { %v690_v29 = vpop.f32.mrf.mxu1  ;;  %v642_v33 = vadd.f32 %v4005_v13, %v641_v28 }
 0x100   : > { %v691_v34 = vadd.f32 %v690_v29, %v642_v33 }
 0x102   : > { %v717_v38 = vmax.f32 %v691_v34, 0.0 }
 0x104   : > { %v728_v39 = vpack.c.bf16 %v717_v38, %v716_v35  ;;  %v877_v38 = vpop.f32.mrf.mxu3 }
 0x105   : > { %v644_v41 = vpop.f32.mrf.mxu0 }
 0x106   : > { %v693_v43 = vpop.f32.mrf.mxu1  ;;  %2915 = vmatmul.msk.bf16.gmra.mxu2 %vm752_vm0, %v728_v39  ;;  %v645_v31 = vadd.f32 %v4005_v13, %v644_v41 }
 0x108   : > { %v694_v21 = vadd.f32 %v693_v43, %v645_v31  ;;  %v3180_v31 = vld [vmem:[%s4864_s6 + $0x18] sm:$0xff] }
 0x109   : > { %2980 = vmatmul.msk.bf16.gmra.mxu1 %vm752_vm0, %v1241_v40  ;;  %v3178_v40 = vld [vmem:[%s4864_s6 + $0x8] sm:$0xff]  ;;  %1102 = vmatpush.bf16.msrb.mxu3 %v3180_v31 }
 0x10a   : > { %v718_v53 = vmax.f32 %v694_v21, 0.0  ;;  %1187 = vmatpush.bf16.msrb.mxu0 %v3178_v40 }
 0x10c   : > { %v880_v43 = vpop.f32.mrf.mxu3 }
 0x10d   : > { %v646_v46 = vpop.f32.mrf.mxu0 }
 0x10e   : > { %v695_v47 = vpop.f32.mrf.mxu1  ;;  %v647_v50 = vadd.f32 %v4005_v13, %v646_v46 }
 0x110   : > { %v696_v52 = vadd.f32 %v695_v47, %v647_v50 }
 0x112   : > { %v719_v55 = vmax.f32 %v696_v52, 0.0 }
 0x114   : > { %v729_v56 = vpack.c.bf16 %v719_v55, %v718_v53  ;;  %v882_v47 = vpop.f32.mrf.mxu3 }
 0x115   : > { %v649_v59 = vpop.f32.mrf.mxu0 }
 0x116   : > { %v698_v61 = vpop.f32.mrf.mxu1  ;;  %2916 = vmatmul.msk.bf16.gmra.mxu2 %vm752_vm0, %v729_v56  ;;  %v650_v36 = vadd.f32 %v4005_v13, %v649_v59 }
 0x118   : > { %v699_v26 = vadd.f32 %v698_v61, %v650_v36 }
 0x119   : > { %2981 = vmatmul.msk.bf16.gmra.mxu1 %vm752_vm0, %v1243_v58 }
 0x11a   : > { %v720_v15 = vmax.f32 %v699_v26, 0.0 }
 0x11d   : > { %v651_v2 = vpop.f32.mrf.mxu0 }
 0x11e   : > { %v700_v4 = vpop.f32.mrf.mxu1  ;;  %v652_v10 = vadd.f32 %v4005_v13, %v651_v2 }
 0x120   : > { %v701_v12 = vadd.f32 %v700_v4, %v652_v10 }
 0x122   : > { %v721_v17 = vmax.f32 %v701_v12, 0.0 }
 0x124   : > { %v730_v18 = vpack.c.bf16 %v721_v17, %v720_v15 }
 0x125   : > { %v654_v20 = vpop.f32.mrf.mxu0 }
 0x126   : > { %v703_v22 = vpop.f32.mrf.mxu1  ;;  %2917 = vmatmul.msk.bf16.gmra.mxu2 %vm752_vm0, %v730_v18  ;;  %v655_v24 = vadd.f32 %v4005_v13, %v654_v20 }
 0x128   : > { %v704_v28 = vadd.f32 %v703_v22, %v655_v24 }
 0x129   : > { %2982 = vmatmul.msk.bf16.gmra.mxu1 %vm752_vm0, %v1245_v19 }
 0x12a   : > { %v722_v33 = vmax.f32 %v704_v28, 0.0 }
 0x12d   : > { %v656_v27 = vpop.f32.mrf.mxu0 }
 0x12e   : > { %v705_v37 = vpop.f32.mrf.mxu1  ;;  %v657_v29 = vadd.f32 %v4005_v13, %v656_v27  ;;  %v3177_v13 = vld [vmem:[%s4864_s6] sm:$0xff] }
 0x12f   : > { %1188 = vmatpush.bf16.msrb.mxu0 %v3177_v13 }
 0x130   : > { %v706_v30 = vadd.f32 %v705_v37, %v657_v29 }
 0x132   : > { %v723_v34 = vmax.f32 %v706_v30, 0.0 }
 0x134   : > { %v731_v35 = vpack.c.bf16 %v723_v34, %v722_v33 }
 0x136   : > { %v1279_v39 = vpop.f32.mrf.mxu1  ;;  %2918 = vmatmul.msk.bf16.gmra.mxu2 %vm752_vm0, %v731_v35 }
 0x139   : > { %3023 = vmatmul.msk.bf16.vlgmr.msra.gmra.mxu1 %vm752_vm0, %v3838_v42  ;;  %v4089_v42 = vld [vmem:[%s4863_s5] ss:$0 sm:$0xff] }
 0x13e   : > { %v1281_v41 = vpop.f32.mrf.mxu1 }
 0x146   : > { %v1284_v46 = vpop.f32.mrf.mxu1  ;;  %2935 = vmatmul.msk.bf16.vlgmr.msrb.gmra.mxu2 %vm752_vm0, %v3996_v7 }
 0x149   : > { %3024 = vmatmul.msk.bf16.gmra.mxu1 %vm752_vm0, %v3856_v45  ;;  %v786_v21 = vpop.f32.mrf.mxu2  ;;  %v885_v45 = vpop.f32.mrf.mxu3 }
 0x14a   : > { %v4092_v50 = vadd.f32 %v4089_v42, %v786_v21 }
 0x14c   : > { %v876_v53 = vadd.f32 %v875_v25, %v4092_v50  ;;  %v1280_v56 = vadd.f32 %v1279_v39, %v4092_v50 }
 0x14e   : > { %v1286_v52 = vpop.f32.mrf.mxu1  ;;  %3257 = vtanh.f32 %v876_v53 }
 0x14f   : > { %3259 = vtanh.f32 %v1280_v56 }
 0x151   : > { %v788_v55 = vpop.f32.mrf.mxu2  ;;  %v887_v12 = vpop.f32.mrf.mxu3 }
 0x152   : > { %v4097_v7 = vadd.f32 %v4089_v42, %v788_v55 }
 0x154   : > { %v878_v58 = vadd.f32 %v877_v38, %v4097_v7  ;;  %v1282_v59 = vadd.f32 %v1281_v41, %v4097_v7  ;;  %v3258_v2 = vpop.eup %3257 }
 0x155   : > { %v4105_v4 = vpop.eup %3259 }
 0x156   : > { %v1289_v61 = vpop.f32.mrf.mxu1  ;;  %3261 = vtanh.f32 %v878_v58  ;;  %2936 = vmatmul.msk.bf16.gmra.mxu2 %vm752_vm0, %v4007_v14 }
 0x157   : > { %3263 = vtanh.f32 %v1282_v59 }
 0x159   : > { %3025 = vmatmul.msk.bf16.gmra.mxu1 %vm752_vm0, %v3874_v48  ;;  %v791_v36 = vpop.f32.mrf.mxu2  ;;  %v890_v37 = vpop.f32.mrf.mxu3 }
 0x15a   : > { %v4108_v10 = vadd.f32 %v4089_v42, %v791_v36 }
 0x15c   : > { %v3262_v26 = vpop.eup %3261  ;;  %v881_v48 = vadd.f32 %v880_v43, %v4108_v10  ;;  %v1285_v20 = vadd.f32 %v1284_v46, %v4108_v10 }
 0x15d   : > { %v4110_v15 = vpop.eup %3263  ;;  %v931_v18 = vpack.c.bf16 %v3262_v26, %v3258_v2 }
 0x15e   : > { %v1291_v17 = vpop.f32.mrf.mxu1  ;;  %v1335_v14 = vpack.c.bf16 %v4110_v15, %v4105_v4  ;;  %3265 = vtanh.f32 %v881_v48 }
 0x15f   : > { %2967 = vmatmul.msk.bf16.vlgmr.msrb.gmra.mxu0 %vm752_vm0, %v931_v18  ;;  %3267 = vtanh.f32 %v1285_v20 }
 0x161   : > { %v793_v19 = vpop.f32.mrf.mxu2 }
 0x162   : > { %v4118_v22 = vadd.f32 %v4089_v42, %v793_v19 }
 0x164   : > { %v883_v24 = vadd.f32 %v882_v47, %v4118_v22  ;;  %v1287_v25 = vadd.f32 %v1286_v52, %v4118_v22  ;;  %v3266_v29 = vpop.eup %3265 }
 0x165   : > { %v4126_v30 = vpop.eup %3267 }
 0x166   : > { %v1294_v27 = vpop.f32.mrf.mxu1  ;;  %3269 = vtanh.f32 %v883_v24  ;;  %2937 = vmatmul.msk.bf16.gmra.mxu2 %vm752_vm0, %v3985_v5 }
 0x167   : > { %3271 = vtanh.f32 %v1287_v25 }
 0x169   : > { %3026 = vmatmul.msk.bf16.gmra.mxu1 %vm752_vm0, %v3892_v51  ;;  %v796_v28 = vpop.f32.mrf.mxu2  ;;  %v892_v51 = vpop.f32.mrf.mxu3 }
 0x16a   : > { %v4129_v34 = vadd.f32 %v4089_v42, %v796_v28 }
 0x16c   : > { %v3270_v33 = vpop.eup %3269  ;;  %v886_v40 = vadd.f32 %v885_v45, %v4129_v34  ;;  %v1290_v41 = vadd.f32 %v1289_v61, %v4129_v34 }
 0x16d   : > { %v4131_v35 = vpop.eup %3271  ;;  %v932_v39 = vpack.c.bf16 %v3270_v33, %v3266_v29 }
 0x16e   : > { %v1296_v38 = vpop.f32.mrf.mxu1  ;;  %3273 = vtanh.f32 %v886_v40 }
 0x16f   : > { %2968 = vmatmul.msk.bf16.gmra.mxu0 %vm752_vm0, %v932_v39  ;;  %3275 = vtanh.f32 %v1290_v41 }
 0x171   : > { %v798_v13 = vpop.f32.mrf.mxu2  ;;  %v895_v53 = vpop.f32.mrf.mxu3 }
 0x172   : > { %v4139_v43 = vadd.f32 %v4089_v42, %v798_v13 }
 0x174   : > { %v888_v31 = vadd.f32 %v887_v12, %v4139_v43  ;;  %v1292_v46 = vadd.f32 %v1291_v17, %v4139_v43  ;;  %v3274_v52 = vpop.eup %3273 }
 0x175   : > { %v4147_v55 = vpop.eup %3275 }
 0x176   : > { %v1299_v47 = vpop.f32.mrf.mxu1  ;;  %3277 = vtanh.f32 %v888_v31  ;;  %2938 = vmatmul.msk.bf16.gmra.mxu2 %vm752_vm0, %v3998_v8  ;;  %v3179_v8 = vld [vmem:[%s4864_s6 + $0x10] sm:$0xff] }
 0x177   : > { %3279 = vtanh.f32 %v1292_v46  ;;  %1103 = vmatpush.bf16.msrb.mxu3 %v3179_v8  ;;  %v4192_v46 = vpop.permute.xlu2 %1462 }
 0x179   : > { %3027 = vmatmul.msk.bf16.gmra.mxu1 %vm752_vm0, %v3900_v54  ;;  %v801_v21 = vpop.f32.mrf.mxu2  ;;  %v897_v18 = vpop.f32.mrf.mxu3 }
 0x17a   : > { %v4150_v45 = vadd.f32 %v4089_v42, %v801_v21 }
 0x17b   : > { %1494 = vmatpush.bf16.msra.mxu3 %v3935_v0 }
 0x17c   : > { %v3278_v56 = vpop.eup %3277  ;;  %v891_v36 = vadd.f32 %v890_v37, %v4150_v45  ;;  %v1295_v26 = vadd.f32 %v1294_v27, %v4150_v45 }
 0x17d   : > { %v4152_v58 = vpop.eup %3279  ;;  %v933_v61 = vpack.c.bf16 %v3278_v56, %v3274_v52 }
 0x17e   : > { %v1301_v59 = vpop.f32.mrf.mxu1  ;;  %3281 = vtanh.f32 %v891_v36 }
 0x17f   : > { %2969 = vmatmul.msk.bf16.gmra.mxu0 %vm752_vm0, %v933_v61  ;;  %3283 = vtanh.f32 %v1295_v26  ;;  %1495 = vmatpush.bf16.msra.mxu3 %v3945_v1 }
 0x181   : > { %v803_v2 = vpop.f32.mrf.mxu2 }
 0x182   : > { %v4164_v12 = vadd.f32 %v4089_v42, %v803_v2 }
 0x184   : > { %v893_v17 = vadd.f32 %v892_v51, %v4164_v12  ;;  %v1297_v48 = vadd.f32 %v1296_v38, %v4164_v12  ;;  %v3282_v24 = vpop.eup %3281  ;;  %v900_v38 = vpop.f32.mrf.mxu3 }
 0x185   : > { %v4173_v25 = vpop.eup %3283 }
 0x186   : > { %v1304_v19 = vpop.f32.mrf.mxu1  ;;  %3285 = vtanh.f32 %v893_v17  ;;  %2939 = vmatmul.msk.bf16.gmra.mxu2 %vm752_vm0, %v3973_v3  ;;  %v4210_v17 = vpop.permute.xlu2 %1872 }
 0x187   : > { %3287 = vtanh.f32 %v1297_v48 }
 0x189   : > { %3028 = vmatmul.msk.bf16.gmra.mxu1 %vm752_vm0, %v3908_v57  ;;  %v806_v20 = vpop.f32.mrf.mxu2 }
 0x18a   : > { %v4176_v37 = vadd.f32 %v4089_v42, %v806_v20 }
 0x18c   : > { %v3286_v27 = vpop.eup %3285  ;;  %v896_v57 = vadd.f32 %v895_v53, %v4176_v37  ;;  %v1300_v40 = vadd.f32 %v1299_v47, %v4176_v37  ;;  %v902_v47 = vpop.f32.mrf.mxu3 }
 0x18d   : > { %v4178_v28 = vpop.eup %3287  ;;  %v934_v33 = vpack.c.bf16 %v3286_v27, %v3282_v24  ;;  %v4219_v27 = vpop.permute.xlu0 %1460 }
 0x18e   : > { %v1306_v29 = vpop.f32.mrf.mxu1  ;;  %3289 = vtanh.f32 %v896_v57 }
 0x18f   : > { %2970 = vmatmul.msk.bf16.gmra.mxu0 %vm752_vm0, %v934_v33  ;;  %3291 = vtanh.f32 %v1300_v40 }
 0x191   : > { %v808_v39 = vpop.f32.mrf.mxu2 }
 0x192   : > { %v4186_v51 = vadd.f32 %v4089_v42, %v808_v39  ;;  %v4225_v39 = vpop.permute.xlu1 %1870 }
 0x194   : > { %v898_v13 = vadd.f32 %v897_v18, %v4186_v51  ;;  %v1302_v41 = vadd.f32 %v1301_v59, %v4186_v51  ;;  %v3290_v52 = vpop.eup %3289  ;;  %v3181_v18 = vld [vmem:[%s4864_s6 + $0x20] sm:$0xff]  ;;  %v905_v24 = vpop.f32.mrf.mxu3 }
 0x195   : > { %v4196_v53 = vpop.eup %3291 }
 0x196   : > { %v1309_v31 = vpop.f32.mrf.mxu1  ;;  %3293 = vtanh.f32 %v898_v13  ;;  %2940 = vmatmul.msk.bf16.gmra.mxu2 %vm752_vm0, %v3992_v6  ;;  %v3182_v6 = vld [vmem:[%s4864_s6 + $0x28] sm:$0xff] }
 0x197   : > { %3295 = vtanh.f32 %v1302_v41  ;;  %1389 = vmatpush.bf16.msra.mxu2 %v3182_v6  ;;  %v4231_v41 = vpop.permute.xlu2 %1878 }
 0x199   : > { %3029 = vmatmul.msk.bf16.gmra.mxu1 %vm752_vm0, %v3914_v60  ;;  %v811_v21 = vpop.f32.mrf.mxu2 }
 0x19a   : > { %v4199_v59 = vadd.f32 %v4089_v42, %v811_v21 }
 0x19b   : > { %1390 = vmatpush.bf16.msra.mxu2 %v3181_v18 }
 0x19c   : > { %v3294_v56 = vpop.eup %3293  ;;  %v901_v2 = vadd.f32 %v900_v38, %v4199_v59  ;;  %v1305_v48 = vadd.f32 %v1304_v19, %v4199_v59  ;;  %v907_v21 = vpop.f32.mrf.mxu3 }
 0x19d   : > { %v4201_v61 = vpop.eup %3295  ;;  %v935_v36 = vpack.c.bf16 %v3294_v56, %v3290_v52 }
 0x19e   : > { %v1311_v8 = vpop.f32.mrf.mxu1  ;;  %3297 = vtanh.f32 %v901_v2 }
 0x19f   : > { %2971 = vmatmul.msk.bf16.gmra.mxu0 %vm752_vm0, %v935_v36  ;;  %3299 = vtanh.f32 %v1305_v48  ;;  %v4238_v36 = vpop.permute.xlu0 %1868 }
 0x1a1   : > { %v813_v26 = vpop.f32.mrf.mxu2 }
 0x1a2   : > { %v4217_v20 = vadd.f32 %v4089_v42, %v813_v26  ;;  %v4244_v26 = vpop.permute.xlu1 %1876 }
 0x1a4   : > { %v903_v33 = vadd.f32 %v902_v47, %v4217_v20  ;;  %v1307_v38 = vadd.f32 %v1306_v29, %v4217_v20  ;;  %v3298_v40 = vpop.eup %3297 }
 0x1a5   : > { %v4229_v13 = vpop.eup %3299 }
 0x1a6   : > { %v1314_v57 = vpop.f32.mrf.mxu1  ;;  %3301 = vtanh.f32 %v903_v33  ;;  %2941 = vmatmul.msk.bf16.gmra.mxu2 %vm752_vm0, %v4018_v23 }
 0x1a7   : > { %3303 = vtanh.f32 %v1307_v38 }
 0x1a9   : > { %3030 = vmatmul.msk.bf16.gmra.mxu1 %vm752_vm0, %v3928_v63  ;;  %v816_v19 = vpop.f32.mrf.mxu2 }
 0x1aa   : > { %v4234_v29 = vadd.f32 %v4089_v42, %v816_v19 }
 0x1ac   : > { %v3302_v47 = vpop.eup %3301  ;;  %v906_v6 = vadd.f32 %v905_v24, %v4234_v29  ;;  %v1310_v18 = vadd.f32 %v1309_v31, %v4234_v29  ;;  %v910_v24 = vpop.f32.mrf.mxu3 }
 0x1ad   : > { %v4236_v52 = vpop.eup %3303  ;;  %v936_v56 = vpack.c.bf16 %v3302_v47, %v3298_v40  ;;  %v2087_v40 = vpop.permute.xlu2 %2086 }
 0x1ae   : > { %v1316_v23 = vpop.f32.mrf.mxu1  ;;  %3305 = vtanh.f32 %v906_v6  ;;  %v4254_v47 = vpop.permute.xlu0 %1874 }
 0x1af   : > { %2972 = vmatmul.msk.bf16.gmra.mxu0 %vm752_vm0, %v936_v56  ;;  %3307 = vtanh.f32 %v1310_v18 }
 0x1b1   : > { %v818_v2 = vpop.f32.mrf.mxu2 }
 0x1b2   : > { %v4248_v48 = vadd.f32 %v4089_v42, %v818_v2 }
 0x1b4   : > { %v908_v33 = vadd.f32 %v907_v21, %v4248_v48  ;;  %v1312_v38 = vadd.f32 %v1311_v8, %v4248_v48  ;;  %v3306_v56 = vpop.eup %3305  ;;  %v4260_v8 = vpop.permute.xlu1 %1882 }
 0x1b5   : > { %v4257_v6 = vpop.eup %3307  ;;  %v912_v60 = vpop.f32.mrf.mxu3 }
 0x1b6   : > { %v1699_v19 = vpop.f32.mrf.mxu1  ;;  %3309 = vtanh.f32 %v908_v33  ;;  %2942 = vmatmul.msk.bf16.gmra.mxu2 %vm752_vm0, %v4014_v16  ;;  %v4272_v54 = vpop.permute.xlu0 %1880 }
 0x1b7   : > { %3311 = vtanh.f32 %v1312_v38  ;;  %v1700_v21 = vadd.f32 %v1699_v19, %v4092_v50 }
 0x1b9   : > { %3071 = vmatmul.msk.bf16.vlgmr.msrb.gmra.mxu1 %vm752_vm0, %v2087_v40  ;;  %v821_v31 = vpop.f32.mrf.mxu2  ;;  %3313 = vtanh.f32 %v1700_v21 }
 0x1ba   : > { %v4263_v18 = vadd.f32 %v4089_v42, %v821_v31 }
 0x1bc   : > { %v3310_v2 = vpop.eup %3309  ;;  %v911_v19 = vadd.f32 %v910_v24, %v4263_v18  ;;  %v1315_v31 = vadd.f32 %v1314_v57, %v4263_v18 }
 0x1bd   : > { %v4265_v33 = vpop.eup %3311  ;;  %v937_v63 = vpack.c.bf16 %v3310_v2, %v3306_v56 }
 0x1be   : > { %v1701_v16 = vpop.f32.mrf.mxu1 }
 0x1bf   : > { %v1702_v38 = vadd.f32 %v1701_v16, %v4097_v7  ;;  %2973 = vmatmul.msk.bf16.gmra.mxu0 %vm752_vm0, %v937_v63  ;;  %v4280_v21 = vpop.eup %3313  ;;  %v2089_v16 = vpop.permute.xlu1 %2088 }
 0x1c1   : > { %3315 = vtanh.f32 %v1702_v38  ;;  %v823_v3 = vpop.f32.mrf.mxu2  ;;  %v4294_v38 = vpop.permute.xlu0 %2304 }
 0x1c2   : > { %v4276_v5 = vadd.f32 %v4089_v42, %v823_v3  ;;  %3317 = vtanh.f32 %v911_v19 }
 0x1c3   : > { %3319 = vtanh.f32 %v1315_v31 }
 0x1c4   : > { %v913_v56 = vadd.f32 %v912_v60, %v4276_v5  ;;  %v1317_v2 = vadd.f32 %v1316_v23, %v4276_v5 }
 0x1c6   : > { %v1704_v63 = vpop.f32.mrf.mxu1  ;;  %3321 = vtanh.f32 %v913_v56  ;;  %2991 = vmatmul.msk.bf16.vlgmr.msra.gmra.mxu2 %vm752_vm0, %v1335_v14 }
 0x1c7   : > { %v4282_v24 = vpop.eup %3315  ;;  %3323 = vtanh.f32 %v1317_v2  ;;  %v1705_v23 = vadd.f32 %v1704_v63, %v4108_v10 }
 0x1c8   : > { %v3318_v60 = vpop.eup %3317 }
 0x1c9   : > { %3072 = vmatmul.msk.bf16.gmra.mxu1 %vm752_vm0, %v2089_v16  ;;  %v992_v3 = vpop.f32.mrf.mxu2  ;;  %v4291_v57 = vpop.eup %3319  ;;  %3325 = vtanh.f32 %v1705_v23 }
 0x1ca   : > { %v993_v2 = vadd.f32 %v992_v3, %v4092_v50 }
 0x1cc   : > { %v3322_v19 = vpop.eup %3321 }
 0x1cd   : > { %v4296_v31 = vpop.eup %3323  ;;  %v938_v15 = vpack.c.bf16 %v3322_v19, %v3318_v60  ;;  %v2091_v60 = vpop.permute.xlu0 %2090 }
 0x1ce   : > { %v1706_v4 = vpop.f32.mrf.mxu1 }
 0x1cf   : > { %v1707_v14 = vadd.f32 %v1706_v4, %v4118_v22  ;;  %2974 = vmatmul.msk.bf16.gmra.mxu0 %vm752_vm0, %v938_v15  ;;  %v4304_v42 = vpop.eup %3325  ;;  %v4873_v4 = vpack.c.bf16 %v4131_v35, %v4126_v30 }
 0x1d1   : > { %3327 = vtanh.f32 %v1707_v14  ;;  %v994_v16 = vpop.f32.mrf.mxu2 }
 0x1d2   : > { %v995_v63 = vadd.f32 %v994_v16, %v4097_v7  ;;  %3329 = vtanh.f32 %v993_v2 }
 0x1d4   : > { %3331 = vtanh.f32 %v995_v63  ;;  %v4316_v63 = vpop.permute.xlu2 %2306 }
 0x1d6   : > { %v1709_v40 = vpop.f32.mrf.mxu1  ;;  %2992 = vmatmul.msk.bf16.gmra.mxu2 %vm752_vm0, %v4873_v4 }
 0x1d7   : > { %v4306_v19 = vpop.eup %3327  ;;  %v1710_v2 = vadd.f32 %v1709_v40, %v4129_v34 }
 0x1d8   : > { %v1756_v3 = vpack.c.bf16 %v4306_v19, %v4304_v42  ;;  %v3330_v23 = vpop.eup %3329  ;;  %v3514_v42 = vld [vmem:[%s4862_s4] sm:$0xff] }
 0x1d9   : > { %3073 = vmatmul.msk.bf16.gmra.mxu1 %vm752_vm0, %v2091_v60  ;;  %v997_v15 = vpop.f32.mrf.mxu2  ;;  %3333 = vtanh.f32 %v1710_v2 }
 0x1da   : > { %v3332_v14 = vpop.eup %3331  ;;  %v998_v35 = vadd.f32 %v997_v15, %v4108_v10 }
 0x1db   : > { %v1048_v16 = vpack.c.bf16 %v3332_v14, %v3330_v23 }
 0x1dc   : > { %v2093_v14 = vpop.permute.xlu2 %2092 }
 0x1dd   : > { %2951 = vmatmul.msk.bf16.vlgmr.msrb.gmra.mxu3 %vm752_vm0, %v1048_v16 }
 0x1de   : > { %v1711_v56 = vpop.f32.mrf.mxu1  ;;  %1914 = vmatpush.bf16.msrb.mxu3 %v3935_v0  ;;  %v4874_v0 = vpack.c.bf16 %v4152_v58, %v4147_v55 }
 0x1df   : > { %v1712_v30 = vadd.f32 %v1711_v56, %v4139_v43  ;;  %v4324_v40 = vpop.eup %3333 }
 0x1e1   : > { %3335 = vtanh.f32 %v1712_v30  ;;  %v999_v60 = vpop.f32.mrf.mxu2 }
 0x1e2   : > { %v1000_v4 = vadd.f32 %v999_v60, %v4118_v22  ;;  %1915 = vmatpush.bf16.msrb.mxu3 %v3945_v1  ;;  %3337 = vtanh.f32 %v998_v35  ;;  %v4336_v60 = vpop.permute.xlu1 %2308 }
 0x1e4   : > { %3339 = vtanh.f32 %v1000_v4 }
 0x1e6   : > { %v1714_v23 = vpop.f32.mrf.mxu1  ;;  %2993 = vmatmul.msk.bf16.gmra.mxu2 %vm752_vm0, %v4874_v0 }
 0x1e7   : > { %v4326_v16 = vpop.eup %3335  ;;  %v1715_v30 = vadd.f32 %v1714_v23, %v4150_v45 }
 0x1e8   : > { %v3338_v15 = vpop.eup %3337 }
 0x1e9   : > { %3074 = vmatmul.msk.bf16.gmra.mxu1 %vm752_vm0, %v2093_v14  ;;  %v1002_v1 = vpop.f32.mrf.mxu2  ;;  %3341 = vtanh.f32 %v1715_v30 }
 0x1ea   : > { %v3340_v2 = vpop.eup %3339  ;;  %v1003_v58 = vadd.f32 %v1002_v1, %v4129_v34  ;;  %v2095_v23 = vpop.permute.xlu1 %2094 }
 0x1eb   : > { %v1049_v35 = vpack.c.bf16 %v3340_v2, %v3338_v15  ;;  %v4875_v2 = vpack.c.bf16 %v4178_v28, %v4173_v25 }
 0x1ed   : > { %2952 = vmatmul.msk.bf16.gmra.mxu3 %vm752_vm0, %v1049_v35 }
 0x1ee   : > { %v1716_v4 = vpop.f32.mrf.mxu1 }
 0x1ef   : > { %v1717_v55 = vadd.f32 %v1716_v4, %v4164_v12  ;;  %v4342_v56 = vpop.eup %3341 }
 0x1f1   : > { %3343 = vtanh.f32 %v1717_v55  ;;  %v1004_v0 = vpop.f32.mrf.mxu2 }
 0x1f2   : > { %v1005_v14 = vadd.f32 %v1004_v0, %v4139_v43  ;;  %3345 = vtanh.f32 %v1003_v58  ;;  %v4353_v58 = vpop.permute.xlu0 %2310 }
 0x1f4   : > { %3347 = vtanh.f32 %v1005_v14 }
 0x1f6   : > { %2994 = vmatmul.msk.bf16.gmra.mxu2 %vm752_vm0, %v4875_v2  ;;  %v4876_v2 = vpack.c.bf16 %v4201_v61, %v4196_v53  ;;  %v4877_v61 = vpack.c.bf16 %v4236_v52, %v4229_v13 }
 0x1f7   : > { %v4344_v15 = vpop.eup %3343 }
 0x1f8   : > { %v3346_v1 = vpop.eup %3345 }
 0x1f9   : > { %3075 = vmatmul.msk.bf16.gmra.mxu1 %vm752_vm0, %v2095_v23  ;;  %v1007_v35 = vpop.f32.mrf.mxu2 }
 0x1fa   : > { %v3348_v4 = vpop.eup %3347  ;;  %v1008_v0 = vadd.f32 %v1007_v35, %v4150_v45  ;;  %v2097_v28 = vpop.permute.xlu0 %2096 }
 0x1fb   : > { %v1050_v55 = vpack.c.bf16 %v3348_v4, %v3346_v1 }
 0x1fc   : > { %3349 = vtanh.f32 %v1008_v0 }
 0x1fd   : > { %2953 = vmatmul.msk.bf16.gmra.mxu3 %vm752_vm0, %v1050_v55  ;;  %v4363_v55 = vpop.permute.xlu2 %2312 }
 0x201   : > { %v1009_v14 = vpop.f32.mrf.mxu2 }
 0x202   : > { %v1010_v25 = vadd.f32 %v1009_v14, %v4164_v12  ;;  %v3350_v23 = vpop.eup %3349 }
 0x204   : > { %3351 = vtanh.f32 %v1010_v25 }
 0x205   : > { %v2099_v53 = vpop.permute.xlu2 %2098 }
 0x206   : > { %2995 = vmatmul.msk.bf16.gmra.mxu2 %vm752_vm0, %v4876_v2 }
 0x209   : > { %3076 = vmatmul.msk.bf16.gmra.mxu1 %vm752_vm0, %v2097_v28  ;;  %v1012_v1 = vpop.f32.mrf.mxu2 }
 0x20a   : > { %v3352_v4 = vpop.eup %3351  ;;  %v1013_v35 = vadd.f32 %v1012_v1, %v4176_v37  ;;  %v3186_v1 = vld [vmem:[%s4864_s6 + $0x48] sm:$0xff] }
 0x20b   : > { %v1051_v30 = vpack.c.bf16 %v3352_v4, %v3350_v23  ;;  %1809 = vmatpush.bf16.msrb.mxu2 %v3186_v1 }
 0x20c   : > { %3353 = vtanh.f32 %v1013_v35  ;;  %v3185_v35 = vld [vmem:[%s4864_s6 + $0x40] sm:$0xff] }
 0x20d   : > { %2954 = vmatmul.msk.bf16.gmra.mxu3 %vm752_vm0, %v1051_v30  ;;  %v4373_v30 = vpop.permute.xlu1 %2314 }
 0x20e   : > { %4878 = vst [vmem:[#allocation8_spill] sm:$0xff] %v4373_v30 }
 0x20f   : > { %1810 = vmatpush.bf16.msrb.mxu2 %v3185_v35 }
 0x211   : > { %v1014_v0 = vpop.f32.mrf.mxu2 }
 0x212   : > { %v1015_v14 = vadd.f32 %v1014_v0, %v4186_v51  ;;  %v3354_v25 = vpop.eup %3353 }
 0x214   : > { %3355 = vtanh.f32 %v1015_v14  ;;  %v4879_v14 = vpack.c.bf16 %v4265_v33, %v4257_v6  ;;  %v4880_v6 = vpack.c.bf16 %v4296_v31, %v4291_v57  ;;  %v4881_v57 = vpack.c.bf16 %v4282_v24, %v4280_v21 }
 0x215   : > { %v2101_v0 = vpop.permute.xlu1 %2100 }
 0x216   : > { %2996 = vmatmul.msk.bf16.gmra.mxu2 %vm752_vm0, %v4877_v61 }
 0x219   : > { %3077 = vmatmul.msk.bf16.gmra.mxu1 %vm752_vm0, %v2099_v53  ;;  %v1017_v28 = vpop.f32.mrf.mxu2 }
 0x21a   : > { %v3356_v2 = vpop.eup %3355  ;;  %v1018_v4 = vadd.f32 %v1017_v28, %v4199_v59 }
 0x21b   : > { %v1052_v23 = vpack.c.bf16 %v3356_v2, %v3354_v25 }
 0x21c   : > { %3357 = vtanh.f32 %v1018_v4 }
 0x21d   : > { %2955 = vmatmul.msk.bf16.gmra.mxu3 %vm752_vm0, %v1052_v23 }
 0x221   : > { %v1019_v13 = vpop.f32.mrf.mxu2 }
 0x222   : > { %v1020_v52 = vadd.f32 %v1019_v13, %v4217_v20  ;;  %v3358_v53 = vpop.eup %3357 }
 0x224   : > { %3359 = vtanh.f32 %v1020_v52  ;;  %v1719_v52 = vpop.f32.mrf.mxu1 }
 0x226   : > { %2997 = vmatmul.msk.bf16.gmra.mxu2 %vm752_vm0, %v4879_v14 }
 0x229   : > { %3078 = vmatmul.msk.bf16.gmra.mxu1 %vm752_vm0, %v2101_v0  ;;  %v1022_v61 = vpop.f32.mrf.mxu2 }
 0x22a   : > { %v3360_v25 = vpop.eup %3359  ;;  %v1023_v2 = vadd.f32 %v1022_v61, %v4234_v29 }
 0x22b   : > { %v1053_v28 = vpack.c.bf16 %v3360_v25, %v3358_v53  ;;  %v1190_v53 = vpop.f32.mrf.mxu0 }
 0x22c   : > { %3361 = vtanh.f32 %v1023_v2  ;;  %v1721_v25 = vpop.f32.mrf.mxu1 }
 0x22d   : > { %2956 = vmatmul.msk.bf16.gmra.mxu3 %vm752_vm0, %v1053_v28 }
 0x231   : > { %v1024_v23 = vpop.f32.mrf.mxu2 }
 0x232   : > { %v1025_v1 = vadd.f32 %v1024_v23, %v4248_v48  ;;  %v3362_v33 = vpop.eup %3361 }
 0x234   : > { %3363 = vtanh.f32 %v1025_v1  ;;  %v1192_v1 = vpop.f32.mrf.mxu0 }
 0x236   : > { %2998 = vmatmul.msk.bf16.gmra.mxu2 %vm752_vm0, %v4880_v6  ;;  %v1724_v6 = vpop.f32.mrf.mxu1 }
 0x239   : > { %v1027_v4 = vpop.f32.mrf.mxu2 }
 0x23a   : > { %v3364_v13 = vpop.eup %3363  ;;  %v1028_v0 = vadd.f32 %v1027_v4, %v4263_v18  ;;  %v3184_v4 = vld [vmem:[%s4864_s6 + $0x38] sm:$0xff] }
 0x23b   : > { %v1054_v35 = vpack.c.bf16 %v3364_v13, %v3362_v33  ;;  %1607 = vmatpush.bf16.msra.mxu0 %v3184_v4 }
 0x23c   : > { %3365 = vtanh.f32 %v1028_v0  ;;  %v1195_v13 = vpop.f32.mrf.mxu0 }
 0x23d   : > { %2957 = vmatmul.msk.bf16.gmra.mxu3 %vm752_vm0, %v1054_v35  ;;  %v3513_v35 = vld [vmem:[%s4862_s4 + $0x8] sm:$0xff] }
 0x23e   : > { %v1726_v21 = vpop.f32.mrf.mxu1 }
 0x241   : > { %v1029_v14 = vpop.f32.mrf.mxu2 }
 0x242   : > { %v1030_v61 = vadd.f32 %v1029_v14, %v4276_v5  ;;  %v3366_v31 = vpop.eup %3365 }
 0x244   : > { %3367 = vtanh.f32 %v1030_v61  ;;  %v1197_v0 = vpop.f32.mrf.mxu0 }
 0x246   : > { %3039 = vmatmul.msk.bf16.vlgmr.msrb.gmra.mxu2 %vm752_vm0, %v4881_v57  ;;  %v1729_v19 = vpop.f32.mrf.mxu1 }
 0x249   : > { %v1392_v28 = vpop.f32.mrf.mxu2 }
 0x24a   : > { %v3368_v2 = vpop.eup %3367 }
 0x24b   : > { %v1055_v23 = vpack.c.bf16 %v3368_v2, %v3366_v31 }
 0x24d   : > { %2958 = vmatmul.msk.bf16.gmra.mxu3 %vm752_vm0, %v1055_v23  ;;  %v1200_v23 = vpop.f32.mrf.mxu0 }
 0x251   : > { %v1394_v33 = vpop.f32.mrf.mxu2 }
 0x256   : > { %3040 = vmatmul.msk.bf16.gmra.mxu2 %vm752_vm0, %v1756_v3 }
 0x259   : > { %v1397_v24 = vpop.f32.mrf.mxu2 }
 0x25d   : > { %2999 = vmatmul.msk.bf16.vlgmr.msra.gmra.mxu3 %vm752_vm0, %v4025_v32  ;;  %v4882_v32 = vpack.c.bf16 %v4326_v16, %v4324_v40  ;;  %v4883_v40 = vpack.c.bf16 %v4344_v15, %v4342_v56  ;;  %v1722_v16 = vadd.f32 %v1721_v25, %v4186_v51 }
 0x25e   : > { %2350 = vmatpush.bf16.msra.mxu3 %v3513_v35  ;;  %v1731_v35 = vpop.f32.mrf.mxu1 }
 0x25f   : > { %3369 = vtanh.f32 %v1722_v16  ;;  %v1725_v16 = vadd.f32 %v1724_v6, %v4199_v59 }
 0x260   : > { %v1105_v14 = vpop.f32.mrf.mxu3 }
 0x261   : > { %v1191_v61 = vadd.f32 %v1190_v53, %v1105_v14  ;;  %v1399_v57 = vpop.f32.mrf.mxu2 }
 0x262   : > { %2351 = vmatpush.bf16.msra.mxu3 %v3514_v42 }
 0x263   : > { %v4419_v3 = vadd.f32 %v1392_v28, %v1191_v61  ;;  %v1202_v28 = vpop.f32.mrf.mxu0 }
 0x265   : > { %v3370_v15 = vpop.eup %3369 }
 0x266   : > { %3041 = vmatmul.msk.bf16.gmra.mxu2 %vm752_vm0, %v4882_v32  ;;  %v1720_v32 = vadd.f32 %v1719_v52, %v4176_v37  ;;  %v1727_v52 = vadd.f32 %v1726_v21, %v4217_v20  ;;  %v3183_v21 = vld [vmem:[%s4864_s6 + $0x30] sm:$0xff] }
 0x267   : > { %1608 = vmatpush.bf16.msra.mxu0 %v3183_v21 }
 0x268   : > { %v1107_v31 = vpop.f32.mrf.mxu3  ;;  %3371 = vtanh.f32 %v1720_v32 }
 0x269   : > { %v1193_v2 = vadd.f32 %v1192_v1, %v1107_v31  ;;  %v1402_v53 = vpop.f32.mrf.mxu2  ;;  %v4436_v1 = vpop.f32.mrf.mxu1  ;;  %3373 = vtanh.f32 %v1727_v52  ;;  %v1730_v52 = vadd.f32 %v1729_v19, %v4234_v29  ;;  %v3189_v19 = vld [vmem:[%s4864_s6 + $0x60] sm:$0xff] }
 0x26a   : > { %3375 = vtanh.f32 %v1725_v16 }
 0x26b   : > { %v4425_v4 = vadd.f32 %v1394_v33, %v1193_v2 }
 0x26d   : > { %3000 = vmatmul.msk.bf16.gmra.mxu3 %vm752_vm0, %v4033_v49 }
 0x26e   : > { %v3372_v25 = vpop.eup %3371 }
 0x270   : > { %v1110_v14 = vpop.f32.mrf.mxu3 }
 0x271   : > { %v1196_v42 = vadd.f32 %v1195_v13, %v1110_v14  ;;  %v1404_v61 = vpop.f32.mrf.mxu2  ;;  %v1205_v13 = vpop.f32.mrf.mxu0 }
 0x272   : > { %v1736_v2 = vpop.f32.mrf.mxu1 }
 0x273   : > { %v4429_v30 = vadd.f32 %v1397_v24, %v1196_v42 }
 0x276   : > { %3042 = vmatmul.msk.bf16.gmra.mxu2 %vm752_vm0, %v4883_v40  ;;  %v1759_v40 = vpack.c.bf16 %v3370_v15, %v3372_v25 }
 0x278   : > { %v1112_v33 = vpop.f32.mrf.mxu3 }
 0x279   : > { %v1198_v31 = vadd.f32 %v1197_v0, %v1112_v33  ;;  %v1407_v24 = vpop.f32.mrf.mxu2  ;;  %v1207_v0 = vpop.f32.mrf.mxu0 }
 0x27a   : > { %v2135_v32 = vpop.f32.mrf.mxu1 }
 0x27b   : > { %v4439_v49 = vadd.f32 %v1399_v57, %v1198_v31 }
 0x27d   : > { %3001 = vmatmul.msk.bf16.gmra.mxu3 %vm752_vm0, %v4041_v9 }
 0x280   : > { %v1115_v56 = vpop.f32.mrf.mxu3 }
 0x281   : > { %v1201_v14 = vadd.f32 %v1200_v23, %v1115_v56  ;;  %v1409_v9 = vpop.f32.mrf.mxu2  ;;  %v1210_v15 = vpop.f32.mrf.mxu0 }
 0x283   : > { %v4443_v42 = vadd.f32 %v1402_v53, %v1201_v14  ;;  %v3374_v53 = vpop.eup %3373 }
 0x284   : > { %v3376_v14 = vpop.eup %3375 }
 0x285   : > { %v1760_v25 = vpack.c.bf16 %v3374_v53, %v3376_v14  ;;  %v1737_v14 = vadd.f32 %v1736_v2, %v4276_v5 }
 0x286   : > { %3043 = vmatmul.msk.bf16.gmra.mxu2 %vm752_vm0, %v1759_v40  ;;  %v1732_v40 = vadd.f32 %v1731_v35, %v4248_v48 }
 0x288   : > { %v1117_v57 = vpop.f32.mrf.mxu3  ;;  %3377 = vtanh.f32 %v1732_v40 }
 0x289   : > { %v1203_v33 = vadd.f32 %v1202_v28, %v1117_v57  ;;  %v1412_v28 = vpop.f32.mrf.mxu2  ;;  %v1212_v16 = vpop.f32.mrf.mxu0  ;;  %3379 = vtanh.f32 %v1730_v52 }
 0x28a   : > { %3381 = vtanh.f32 %v1737_v14 }
 0x28b   : > { %v4448_v31 = vadd.f32 %v1404_v61, %v1203_v33  ;;  %v2137_v61 = vpop.f32.mrf.mxu1 }
 0x28d   : > { %3002 = vmatmul.msk.bf16.gmra.mxu3 %vm752_vm0, %v4049_v11 }
 0x28e   : > { %v3378_v53 = vpop.eup %3377 }
 0x290   : > { %v1120_v23 = vpop.f32.mrf.mxu3 }
 0x291   : > { %v1206_v56 = vadd.f32 %v1205_v13, %v1120_v23  ;;  %v1414_v33 = vpop.f32.mrf.mxu2 }
 0x293   : > { %v4455_v6 = vadd.f32 %v1407_v24, %v1206_v56  ;;  %v3190_v24 = vld [vmem:[%s4864_s6 + $0x68] sm:$0xff]  ;;  %v2140_v23 = vpop.f32.mrf.mxu1 }
 0x294   : > { %2245 = vmatpush.bf16.msra.mxu2 %v3190_v24 }
 0x296   : > { %3044 = vmatmul.msk.bf16.gmra.mxu2 %vm752_vm0, %v1760_v25 }
 0x298   : > { %v1122_v11 = vpop.f32.mrf.mxu3  ;;  %2246 = vmatpush.bf16.msra.mxu2 %v3189_v19 }
 0x299   : > { %v1208_v13 = vadd.f32 %v1207_v0, %v1122_v11  ;;  %v3380_v0 = vpop.eup %3379  ;;  %v1417_v25 = vpop.f32.mrf.mxu2  ;;  %v1735_v11 = vadd.f32 %v4436_v1, %v4263_v18  ;;  %v2138_v1 = vadd.f32 %v2137_v61, %v4097_v7 }
 0x29a   : > { %v1761_v21 = vpack.c.bf16 %v3378_v53, %v3380_v0 }
 0x29b   : > { %v4460_v57 = vadd.f32 %v1409_v9, %v1208_v13  ;;  %3383 = vtanh.f32 %v1735_v11 }
 0x29c   : > { %3385 = vtanh.f32 %v2138_v1  ;;  %v2141_v1 = vadd.f32 %v2140_v23, %v4108_v10  ;;  %v3188_v23 = vld [vmem:[%s4864_s6 + $0x58] sm:$0xff] }
 0x29d   : > { %3003 = vmatmul.msk.bf16.gmra.mxu3 %vm752_vm0, %v4057_v44  ;;  %v1215_v44 = vpop.f32.mrf.mxu0  ;;  %2027 = vmatpush.bf16.msrb.mxu0 %v3188_v23 }
 0x2a0   : > { %v1125_v35 = vpop.f32.mrf.mxu3 }
 0x2a1   : > { %v1211_v56 = vadd.f32 %v1210_v15, %v1125_v35  ;;  %v2142_v15 = vpop.f32.mrf.mxu1  ;;  %v3382_v35 = vpop.eup %3381 }
 0x2a2   : > { %v3384_v2 = vpop.eup %3383 }
 0x2a3   : > { %v4470_v9 = vadd.f32 %v1412_v28, %v1211_v56  ;;  %v1419_v56 = vpop.f32.mrf.mxu2 }
 0x2a5   : > { %v1217_v28 = vpop.f32.mrf.mxu0 }
 0x2a6   : > { %3045 = vmatmul.msk.bf16.gmra.mxu2 %vm752_vm0, %v1761_v21  ;;  %v1762_v21 = vpack.c.bf16 %v3382_v35, %v3384_v2 }
 0x2a8   : > { %v1127_v40 = vpop.f32.mrf.mxu3 }
 0x2a9   : > { %v1213_v52 = vadd.f32 %v1212_v16, %v1127_v40  ;;  %v2145_v19 = vpop.f32.mrf.mxu1 }
 0x2ab   : > { %v4476_v13 = vadd.f32 %v1414_v33, %v1213_v52  ;;  %v2136_v33 = vadd.f32 %v2135_v32, %v4092_v50  ;;  %v1422_v11 = vpop.f32.mrf.mxu2  ;;  %v3386_v52 = vpop.eup %3385 }
 0x2ad   : > { %3004 = vmatmul.msk.bf16.gmra.mxu3 %vm752_vm0, %v4063_v62  ;;  %v1220_v40 = vpop.f32.mrf.mxu0  ;;  %3387 = vtanh.f32 %v2136_v33 }
 0x2b0   : > { %v1130_v24 = vpop.f32.mrf.mxu3 }
 0x2b1   : > { %v1216_v53 = vadd.f32 %v1215_v44, %v1130_v24  ;;  %v2147_v44 = vpop.f32.mrf.mxu1 }
 0x2b3   : > { %v4480_v0 = vadd.f32 %v1417_v25, %v1216_v53  ;;  %v3388_v35 = vpop.eup %3387  ;;  %v1424_v32 = vpop.f32.mrf.mxu2 }
 0x2b4   : > { %v2191_v61 = vpack.c.bf16 %v3386_v52, %v3388_v35 }
 0x2b5   : > { %v1222_v2 = vpop.f32.mrf.mxu0 }
 0x2b6   : > { %3046 = vmatmul.msk.bf16.gmra.mxu2 %vm752_vm0, %v1762_v21 }
 0x2b8   : > { %v1132_v16 = vpop.f32.mrf.mxu3 }
 0x2b9   : > { %v1218_v14 = vadd.f32 %v1217_v28, %v1132_v16  ;;  %v2143_v28 = vadd.f32 %v2142_v15, %v4118_v22 }
 0x2bb   : > { %v4485_v62 = vadd.f32 %v1419_v56, %v1218_v14  ;;  %v2150_v56 = vpop.f32.mrf.mxu1  ;;  %3389 = vtanh.f32 %v2143_v28  ;;  %v1427_v14 = vpop.f32.mrf.mxu2 }
 0x2bc   : > { %3391 = vtanh.f32 %v2141_v1 }
 0x2bd   : > { %3005 = vmatmul.msk.bf16.gmra.mxu3 %vm752_vm0, %v4219_v27  ;;  %v1225_v33 = vpop.f32.mrf.mxu0 }
 0x2c0   : > { %v1135_v25 = vpop.f32.mrf.mxu3 }
 0x2c1   : > { %v1221_v24 = vadd.f32 %v1220_v40, %v1135_v25 }
 0x2c3   : > { %v4489_v53 = vadd.f32 %v1422_v11, %v1221_v24  ;;  %v3390_v11 = vpop.eup %3389  ;;  %v2152_v25 = vpop.f32.mrf.mxu1 }
 0x2c4   : > { %v3392_v24 = vpop.eup %3391 }
 0x2c5   : > { %v2192_v35 = vpack.c.bf16 %v3390_v11, %v3392_v24 }
 0x2c6   : > { %3087 = vmatmul.msk.bf16.vlgmr.msra.gmra.mxu2 %vm752_vm0, %v2191_v61  ;;  %v2148_v61 = vadd.f32 %v2147_v44, %v4139_v43  ;;  %v2153_v44 = vadd.f32 %v2152_v25, %v4164_v12 }
 0x2c8   : > { %v1137_v21 = vpop.f32.mrf.mxu3  ;;  %3393 = vtanh.f32 %v2148_v61 }
 0x2c9   : > { %v1223_v16 = vadd.f32 %v1222_v2, %v1137_v21  ;;  %v1429_v21 = vpop.f32.mrf.mxu2 }
 0x2cb   : > { %v4494_v27 = vadd.f32 %v1424_v32, %v1223_v16  ;;  %v2146_v32 = vadd.f32 %v2145_v19, %v4129_v34  ;;  %v2155_v1 = vpop.f32.mrf.mxu1 }
 0x2cd   : > { %3006 = vmatmul.msk.bf16.gmra.mxu3 %vm752_vm0, %v4192_v46  ;;  %v1227_v46 = vpop.f32.mrf.mxu0  ;;  %3395 = vtanh.f32 %v2146_v32 }
 0x2ce   : > { %3397 = vtanh.f32 %v2153_v44 }
 0x2d0   : > { %v1140_v40 = vpop.f32.mrf.mxu3 }
 0x2d1   : > { %v1226_v52 = vadd.f32 %v1225_v33, %v1140_v40 }
 0x2d3   : > { %v4498_v15 = vadd.f32 %v1427_v14, %v1226_v52  ;;  %v3394_v14 = vpop.eup %3393  ;;  %v2157_v52 = vpop.f32.mrf.mxu1 }
 0x2d4   : > { %v3396_v40 = vpop.eup %3395 }
 0x2d5   : > { %v2193_v11 = vpack.c.bf16 %v3394_v14, %v3396_v40 }
 0x2d6   : > { %3088 = vmatmul.msk.bf16.gmra.mxu2 %vm752_vm0, %v2192_v35  ;;  %v2151_v35 = vadd.f32 %v2150_v56, %v4150_v45 }
 0x2d8   : > { %v1142_v2 = vpop.f32.mrf.mxu3 }
 0x2d9   : > { %v1228_v28 = vadd.f32 %v1227_v46, %v1142_v2  ;;  %v4517_v46 = vpop.f32.mrf.mxu2 }
 0x2db   : > { %v4506_v16 = vadd.f32 %v1429_v21, %v1228_v28  ;;  %v2160_v61 = vpop.f32.mrf.mxu1 }
 0x2dd   : > { %3047 = vmatmul.msk.bf16.vlgmr.msrb.gmra.mxu3 %vm752_vm0, %v4238_v36  ;;  %v3398_v36 = vpop.eup %3397 }
 0x2e0   : > { %v1497_v33 = vpop.f32.mrf.mxu3 }
 0x2e1   : > { %v1498_v24 = vadd.f32 %v1497_v33, %v4092_v50  ;;  %v2158_v33 = vadd.f32 %v2157_v52, %v4186_v51 }
 0x2e3   : > { %3399 = vtanh.f32 %v1498_v24  ;;  %v4525_v24 = vpop.f32.mrf.mxu2 }
 0x2e6   : > { %3089 = vmatmul.msk.bf16.gmra.mxu2 %vm752_vm0, %v2193_v11  ;;  %v2162_v11 = vpop.f32.mrf.mxu1 }
 0x2e8   : > { %v1499_v19 = vpop.f32.mrf.mxu3 }
 0x2e9   : > { %v1500_v23 = vadd.f32 %v1499_v19, %v4097_v7  ;;  %v3400_v25 = vpop.eup %3399 }
 0x2eb   : > { %3401 = vtanh.f32 %v1500_v23 }
 0x2ec   : > { %3403 = vtanh.f32 %v2151_v35 }
 0x2ed   : > { %3048 = vmatmul.msk.bf16.gmra.mxu3 %vm752_vm0, %v4225_v39  ;;  %v2156_v39 = vadd.f32 %v2155_v1, %v4176_v37  ;;  %3405 = vtanh.f32 %v2158_v33  ;;  %v4529_v1 = vpop.f32.mrf.mxu2 }
 0x2f0   : > { %v1502_v2 = vpop.f32.mrf.mxu3 }
 0x2f1   : > { %v3402_v32 = vpop.eup %3401  ;;  %v1503_v14 = vadd.f32 %v1502_v2, %v4108_v10  ;;  %v2165_v2 = vpop.f32.mrf.mxu1 }
 0x2f2   : > { %v1553_v28 = vpack.c.bf16 %v3402_v32, %v3400_v25  ;;  %v3404_v21 = vpop.eup %3403 }
 0x2f3   : > { %v2194_v56 = vpack.c.bf16 %v3398_v36, %v3404_v21  ;;  %3407 = vtanh.f32 %v1503_v14  ;;  %v3406_v52 = vpop.eup %3405 }
 0x2f4   : > { %3015 = vmatmul.msk.bf16.vlgmr.msra.gmra.mxu0 %vm752_vm0, %v1553_v28  ;;  %v2163_v28 = vadd.f32 %v2162_v11, %v4217_v20 }
 0x2f6   : > { %3090 = vmatmul.msk.bf16.gmra.mxu2 %vm752_vm0, %v2194_v56 }
 0x2f8   : > { %v1504_v40 = vpop.f32.mrf.mxu3 }
 0x2f9   : > { %v1505_v44 = vadd.f32 %v1504_v40, %v4118_v22  ;;  %v3408_v19 = vpop.eup %3407  ;;  %v2167_v14 = vpop.f32.mrf.mxu1 }
 0x2fa   : > { %v4539_v40 = vpop.f32.mrf.mxu2 }
 0x2fb   : > { %3409 = vtanh.f32 %v1505_v44 }
 0x2fc   : > { %3411 = vtanh.f32 %v2156_v39 }
 0x2fd   : > { %3049 = vmatmul.msk.bf16.gmra.mxu3 %vm752_vm0, %v4210_v17  ;;  %v2161_v17 = vadd.f32 %v2160_v61, %v4199_v59  ;;  %3413 = vtanh.f32 %v2163_v28 }
 0x300   : > { %v1507_v35 = vpop.f32.mrf.mxu3 }
 0x301   : > { %v3410_v23 = vpop.eup %3409  ;;  %v1508_v21 = vadd.f32 %v1507_v35, %v4129_v34 }
 0x302   : > { %v1554_v36 = vpack.c.bf16 %v3410_v23, %v3408_v19  ;;  %v3412_v25 = vpop.eup %3411  ;;  %v3187_v23 = vld [vmem:[%s4864_s6 + $0x50] sm:$0xff] }
 0x303   : > { %v2195_v32 = vpack.c.bf16 %v3406_v52, %v3412_v25  ;;  %3415 = vtanh.f32 %v1508_v21  ;;  %v3414_v39 = vpop.eup %3413  ;;  %2028 = vmatpush.bf16.msrb.mxu0 %v3187_v23  ;;  %v2166_v21 = vadd.f32 %v2165_v2, %v4234_v29 }
 0x304   : > { %3016 = vmatmul.msk.bf16.gmra.mxu0 %vm752_vm0, %v1554_v36  ;;  %v2168_v36 = vadd.f32 %v2167_v14, %v4248_v48 }
 0x306   : > { %3091 = vmatmul.msk.bf16.gmra.mxu2 %vm752_vm0, %v2195_v32  ;;  %v4548_v32 = vpop.f32.mrf.mxu2 }
 0x308   : > { %v1509_v56 = vpop.f32.mrf.mxu3 }
 0x309   : > { %v1510_v33 = vadd.f32 %v1509_v56, %v4139_v43  ;;  %v3416_v11 = vpop.eup %3415 }
 0x30b   : > { %3417 = vtanh.f32 %v1510_v33 }
 0x30c   : > { %3419 = vtanh.f32 %v2161_v17 }
 0x30d   : > { %3050 = vmatmul.msk.bf16.gmra.mxu3 %vm752_vm0, %v4254_v47  ;;  %v2170_v47 = vpop.f32.mrf.mxu1  ;;  %3421 = vtanh.f32 %v2168_v36 }
 0x310   : > { %v1512_v44 = vpop.f32.mrf.mxu3 }
 0x311   : > { %v3418_v52 = vpop.eup %3417  ;;  %v1513_v25 = vadd.f32 %v1512_v44, %v4150_v45  ;;  %v4554_v44 = vpop.f32.mrf.mxu2 }
 0x312   : > { %v1555_v19 = vpack.c.bf16 %v3418_v52, %v3416_v11  ;;  %v3420_v35 = vpop.eup %3419 }
 0x313   : > { %v2196_v61 = vpack.c.bf16 %v3414_v39, %v3420_v35  ;;  %3423 = vtanh.f32 %v1513_v25  ;;  %v3422_v17 = vpop.eup %3421 }
 0x314   : > { %3017 = vmatmul.msk.bf16.gmra.mxu0 %vm752_vm0, %v1555_v19 }
 0x315   : > { %v2172_v11 = vpop.f32.mrf.mxu1 }
 0x316   : > { %3092 = vmatmul.msk.bf16.gmra.mxu2 %vm752_vm0, %v2196_v61  ;;  %v2173_v35 = vadd.f32 %v2172_v11, %v4276_v5 }
 0x318   : > { %v1514_v28 = vpop.f32.mrf.mxu3 }
 0x319   : > { %v1515_v56 = vadd.f32 %v1514_v28, %v4164_v12  ;;  %v3424_v33 = vpop.eup %3423  ;;  %v4562_v25 = vpop.f32.mrf.mxu2 }
 0x31b   : > { %3425 = vtanh.f32 %v1515_v56 }
 0x31c   : > { %3427 = vtanh.f32 %v2166_v21 }
 0x31d   : > { %3051 = vmatmul.msk.bf16.gmra.mxu3 %vm752_vm0, %v4244_v26  ;;  %v2171_v26 = vadd.f32 %v2170_v47, %v4263_v18  ;;  %3429 = vtanh.f32 %v2173_v35 }
 0x320   : > { %v1517_v14 = vpop.f32.mrf.mxu3 }
 0x321   : > { %v3426_v39 = vpop.eup %3425  ;;  %v1518_v61 = vadd.f32 %v1517_v14, %v4176_v37 }
 0x322   : > { %v1556_v52 = vpack.c.bf16 %v3426_v39, %v3424_v33  ;;  %v3428_v19 = vpop.eup %3427  ;;  %v4567_v39 = vpop.f32.mrf.mxu2 }
 0x323   : > { %v2197_v2 = vpack.c.bf16 %v3422_v17, %v3428_v19  ;;  %3431 = vtanh.f32 %v1518_v61  ;;  %v3430_v28 = vpop.eup %3429 }
 0x324   : > { %3018 = vmatmul.msk.bf16.gmra.mxu0 %vm752_vm0, %v1556_v52 }
 0x326   : > { %3093 = vmatmul.msk.bf16.gmra.mxu2 %vm752_vm0, %v2197_v2 }
 0x328   : > { %v1519_v23 = vpop.f32.mrf.mxu3 }
 0x329   : > { %v1520_v36 = vadd.f32 %v1519_v23, %v4186_v51  ;;  %v3432_v21 = vpop.eup %3431 }
 0x32b   : > { %3433 = vtanh.f32 %v1520_v36 }
 0x32c   : > { %3435 = vtanh.f32 %v2171_v26 }
 0x32d   : > { %3052 = vmatmul.msk.bf16.gmra.mxu3 %vm752_vm0, %v4231_v41 }
 0x330   : > { %v1522_v56 = vpop.f32.mrf.mxu3 }
 0x331   : > { %v3434_v17 = vpop.eup %3433  ;;  %v1523_v11 = vadd.f32 %v1522_v56, %v4199_v59 }
 0x332   : > { %v1557_v33 = vpack.c.bf16 %v3434_v17, %v3432_v21  ;;  %v3436_v14 = vpop.eup %3435  ;;  %v3192_v17 = vld [vmem:[%s4864_s6 + $0x78] sm:$0xff] }
 0x333   : > { %v2198_v47 = vpack.c.bf16 %v3430_v28, %v3436_v14  ;;  %3437 = vtanh.f32 %v1523_v11  ;;  %2463 = vmatpush.bf16.msra.mxu0 %v3192_v17 }
 0x334   : > { %3019 = vmatmul.msk.bf16.gmra.mxu0 %vm752_vm0, %v1557_v33 }
 0x336   : > { %3094 = vmatmul.msk.bf16.gmra.mxu2 %vm752_vm0, %v2198_v47 }
 0x338   : > { %v1524_v52 = vpop.f32.mrf.mxu3 }
 0x339   : > { %v1525_v19 = vadd.f32 %v1524_v52, %v4217_v20  ;;  %v3438_v41 = vpop.eup %3437 }
 0x33b   : > { %3439 = vtanh.f32 %v1525_v19 }
 0x33d   : > { %3053 = vmatmul.msk.bf16.gmra.mxu3 %vm752_vm0, %v4272_v54 }
 0x340   : > { %v1527_v2 = vpop.f32.mrf.mxu3 }
 0x341   : > { %v3440_v35 = vpop.eup %3439  ;;  %v1528_v23 = vadd.f32 %v1527_v2, %v4234_v29 }
 0x342   : > { %v1558_v61 = vpack.c.bf16 %v3440_v35, %v3438_v41 }
 0x343   : > { %3441 = vtanh.f32 %v1528_v23 }
 0x344   : > { %3020 = vmatmul.msk.bf16.gmra.mxu0 %vm752_vm0, %v1558_v61 }
 0x348   : > { %v1529_v26 = vpop.f32.mrf.mxu3 }
 0x349   : > { %v1530_v36 = vadd.f32 %v1529_v26, %v4248_v48  ;;  %v3442_v28 = vpop.eup %3441 }
 0x34b   : > { %3443 = vtanh.f32 %v1530_v36 }
 0x34d   : > { %3054 = vmatmul.msk.bf16.gmra.mxu3 %vm752_vm0, %v4260_v8 }
 0x350   : > { %v1532_v21 = vpop.f32.mrf.mxu3 }
 0x351   : > { %v3444_v56 = vpop.eup %3443  ;;  %v1533_v33 = vadd.f32 %v1532_v21, %v4263_v18 }
 0x352   : > { %v1559_v54 = vpack.c.bf16 %v3444_v56, %v3442_v28 }
 0x353   : > { %3445 = vtanh.f32 %v1533_v33 }
 0x354   : > { %3021 = vmatmul.msk.bf16.gmra.mxu0 %vm752_vm0, %v1559_v54 }
 0x358   : > { %v1534_v14 = vpop.f32.mrf.mxu3 }
 0x359   : > { %v1535_v47 = vadd.f32 %v1534_v14, %v4276_v5  ;;  %v3446_v8 = vpop.eup %3445 }
 0x35b   : > { %3447 = vtanh.f32 %v1535_v47 }
 0x35d   : > { %3095 = vmatmul.msk.bf16.vlgmr.msra.gmra.mxu3 %vm752_vm0, %v4294_v38 }
 0x360   : > { %v1917_v11 = vpop.f32.mrf.mxu3 }
 0x361   : > { %v3448_v52 = vpop.eup %3447  ;;  %v1918_v41 = vadd.f32 %v1917_v11, %v4092_v50 }
 0x362   : > { %v1560_v19 = vpack.c.bf16 %v3448_v52, %v3446_v8 }
 0x363   : > { %3449 = vtanh.f32 %v1918_v41 }
 0x364   : > { %3022 = vmatmul.msk.bf16.gmra.mxu0 %vm752_vm0, %v1560_v19 }
 0x368   : > { %v1919_v2 = vpop.f32.mrf.mxu3 }
 0x369   : > { %v1920_v35 = vadd.f32 %v1919_v2, %v4097_v7  ;;  %v3450_v61 = vpop.eup %3449 }
 0x36b   : > { %3451 = vtanh.f32 %v1920_v35 }
 0x36d   : > { %3096 = vmatmul.msk.bf16.gmra.mxu3 %vm752_vm0, %v4316_v63 }
 0x370   : > { %v1922_v23 = vpop.f32.mrf.mxu3 }
 0x371   : > { %v3452_v26 = vpop.eup %3451  ;;  %v1610_v38 = vpop.f32.mrf.mxu0  ;;  %v1923_v21 = vadd.f32 %v1922_v23, %v4108_v10 }
 0x372   : > { %v1973_v36 = vpack.c.bf16 %v3452_v26, %v3450_v61  ;;  %v4593_v28 = vadd.f32 %v1610_v38, %v4419_v3  ;;  %v3191_v38 = vld [vmem:[%s4864_s6 + $0x70] sm:$0xff] }
 0x373   : > { %3453 = vtanh.f32 %v1923_v21  ;;  %2464 = vmatpush.bf16.msra.mxu0 %v3191_v38 }
 0x374   : > { %3063 = vmatmul.msk.bf16.vlgmr.msrb.gmra.mxu0 %vm752_vm0, %v1973_v36 }
 0x378   : > { %v1924_v56 = vpop.f32.mrf.mxu3 }
 0x379   : > { %v1925_v54 = vadd.f32 %v1924_v56, %v4118_v22  ;;  %v1612_v17 = vpop.f32.mrf.mxu0  ;;  %v3454_v63 = vpop.eup %3453 }
 0x37a   : > { %v4599_v33 = vadd.f32 %v1612_v17, %v4425_v4 }
 0x37b   : > { %3455 = vtanh.f32 %v1925_v54 }
 0x37d   : > { %3097 = vmatmul.msk.bf16.gmra.mxu3 %vm752_vm0, %v4336_v60 }
 0x380   : > { %v1927_v14 = vpop.f32.mrf.mxu3 }
 0x381   : > { %v3456_v3 = vpop.eup %3455  ;;  %v1615_v47 = vpop.f32.mrf.mxu0  ;;  %v1928_v52 = vadd.f32 %v1927_v14, %v4129_v34 }
 0x382   : > { %v4604_v8 = vadd.f32 %v1615_v47, %v4429_v30  ;;  %v1974_v11 = vpack.c.bf16 %v3456_v3, %v3454_v63 }
 0x383   : > { %3457 = vtanh.f32 %v1928_v52 }
 0x384   : > { %3064 = vmatmul.msk.bf16.gmra.mxu0 %vm752_vm0, %v1974_v11 }
 0x388   : > { %v1929_v19 = vpop.f32.mrf.mxu3 }
 0x389   : > { %v1930_v4 = vadd.f32 %v1929_v19, %v4139_v43  ;;  %v1617_v41 = vpop.f32.mrf.mxu0  ;;  %v3458_v60 = vpop.eup %3457 }
 0x38a   : > { %v4610_v2 = vadd.f32 %v1617_v41, %v4439_v49 }
 0x38b   : > { %3459 = vtanh.f32 %v1930_v4 }
 0x38d   : > { %3098 = vmatmul.msk.bf16.gmra.mxu3 %vm752_vm0, %v4353_v58 }
 0x390   : > { %v1932_v30 = vpop.f32.mrf.mxu3 }
 0x391   : > { %v3460_v35 = vpop.eup %3459  ;;  %v1620_v61 = vpop.f32.mrf.mxu0  ;;  %v1933_v49 = vadd.f32 %v1932_v30, %v4150_v45 }
 0x392   : > { %v4615_v23 = vadd.f32 %v1620_v61, %v4443_v42  ;;  %v1975_v26 = vpack.c.bf16 %v3460_v35, %v3458_v60 }
 0x393   : > { %3461 = vtanh.f32 %v1933_v49 }
 0x394   : > { %3065 = vmatmul.msk.bf16.gmra.mxu0 %vm752_vm0, %v1975_v26 }
 0x398   : > { %v1934_v36 = vpop.f32.mrf.mxu3 }
 0x399   : > { %v1935_v58 = vadd.f32 %v1934_v36, %v4164_v12  ;;  %v1622_v21 = vpop.f32.mrf.mxu0  ;;  %v3462_v42 = vpop.eup %3461 }
 0x39a   : > { %v4624_v56 = vadd.f32 %v1622_v21, %v4448_v31  ;;  %v2317_v36 = vpop.permute.xlu0 %2316 }
 0x39b   : > { %3463 = vtanh.f32 %v1935_v58 }
 0x39d   : > { %3099 = vmatmul.msk.bf16.gmra.mxu3 %vm752_vm0, %v4363_v55  ;;  %v4884_v55 = vld [vmem:[#allocation8_spill] sm:$0xff] }
 0x3a0   : > { %v1937_v54 = vpop.f32.mrf.mxu3 }
 0x3a1   : > { %v3464_v17 = vpop.eup %3463  ;;  %v1625_v63 = vpop.f32.mrf.mxu0  ;;  %v1938_v47 = vadd.f32 %v1937_v54, %v4176_v37 }
 0x3a2   : > { %v4629_v14 = vadd.f32 %v1625_v63, %v4455_v6  ;;  %v1976_v3 = vpack.c.bf16 %v3464_v17, %v3462_v42 }
 0x3a3   : > { %3465 = vtanh.f32 %v1938_v47 }
 0x3a4   : > { %3066 = vmatmul.msk.bf16.gmra.mxu0 %vm752_vm0, %v1976_v3 }
 0x3a8   : > { %v1939_v11 = vpop.f32.mrf.mxu3 }
 0x3a9   : > { %v1940_v31 = vadd.f32 %v1939_v11, %v4186_v51  ;;  %v1627_v52 = vpop.f32.mrf.mxu0  ;;  %v3466_v4 = vpop.eup %3465 }
 0x3aa   : > { %v4635_v19 = vadd.f32 %v1627_v52, %v4460_v57 }
 0x3ab   : > { %3467 = vtanh.f32 %v1940_v31  ;;  %v2319_v31 = vpop.permute.xlu2 %2318 }
 0x3ad   : > { %3100 = vmatmul.msk.bf16.gmra.mxu3 %vm752_vm0, %v4884_v55 }
 0x3b0   : > { %v1942_v6 = vpop.f32.mrf.mxu3 }
 0x3b1   : > { %v3468_v41 = vpop.eup %3467  ;;  %v1630_v60 = vpop.f32.mrf.mxu0  ;;  %v1943_v61 = vadd.f32 %v1942_v6, %v4199_v59 }
 0x3b2   : > { %v4640_v30 = vadd.f32 %v1630_v60, %v4470_v9  ;;  %v1977_v35 = vpack.c.bf16 %v3468_v41, %v3466_v4 }
 0x3b3   : > { %3469 = vtanh.f32 %v1943_v61 }
 0x3b4   : > { %3067 = vmatmul.msk.bf16.gmra.mxu0 %vm752_vm0, %v1977_v35 }
 0x3b8   : > { %v1944_v26 = vpop.f32.mrf.mxu3 }
 0x3b9   : > { %v1945_v57 = vadd.f32 %v1944_v26, %v4217_v20  ;;  %v1632_v38 = vpop.f32.mrf.mxu0  ;;  %v3470_v58 = vpop.eup %3469 }
 0x3ba   : > { %v4646_v49 = vadd.f32 %v1632_v38, %v4476_v13 }
 0x3bb   : > { %3471 = vtanh.f32 %v1945_v57 }
 0x3bd   : > { %3101 = vmatmul.msk.bf16.gmra.mxu3 %vm752_vm0, %v2317_v36 }
 0x3c0   : > { %v1947_v9 = vpop.f32.mrf.mxu3 }
 0x3c1   : > { %v3472_v21 = vpop.eup %3471  ;;  %v1635_v42 = vpop.f32.mrf.mxu0  ;;  %v1948_v63 = vadd.f32 %v1947_v9, %v4234_v29 }
 0x3c2   : > { %v4650_v54 = vadd.f32 %v1635_v42, %v4480_v0  ;;  %v1978_v17 = vpack.c.bf16 %v3472_v21, %v3470_v58  ;;  %v3194_v21 = vld [vmem:[#allocation2 + $0x8] sm:$0xff] }
 0x3c3   : > { %3473 = vtanh.f32 %v1948_v63  ;;  %2616 = vmatpush.bf16.msra.mxu1 %v3194_v21 }
 0x3c4   : > { %3068 = vmatmul.msk.bf16.gmra.mxu0 %vm752_vm0, %v1978_v17 }
 0x3c8   : > { %v1949_v3 = vpop.f32.mrf.mxu3 }
 0x3c9   : > { %v1950_v13 = vadd.f32 %v1949_v3, %v4248_v48  ;;  %v1637_v47 = vpop.f32.mrf.mxu0  ;;  %v3474_v52 = vpop.eup %3473 }
 0x3ca   : > { %v4656_v11 = vadd.f32 %v1637_v47, %v4485_v62 }
 0x3cb   : > { %3475 = vtanh.f32 %v1950_v13 }
 0x3cd   : > { %3102 = vmatmul.msk.bf16.gmra.mxu3 %vm752_vm0, %v2319_v31 }
 0x3d0   : > { %v1952_v0 = vpop.f32.mrf.mxu3 }
 0x3d1   : > { %v3476_v55 = vpop.eup %3475  ;;  %v1640_v4 = vpop.f32.mrf.mxu0  ;;  %v1953_v60 = vadd.f32 %v1952_v0, %v4263_v18 }
 0x3d2   : > { %v4660_v6 = vadd.f32 %v1640_v4, %v4489_v53  ;;  %v1979_v41 = vpack.c.bf16 %v3476_v55, %v3474_v52 }
 0x3d3   : > { %3477 = vtanh.f32 %v1953_v60 }
 0x3d4   : > { %3069 = vmatmul.msk.bf16.gmra.mxu0 %vm752_vm0, %v1979_v41 }
 0x3d8   : > { %v1954_v35 = vpop.f32.mrf.mxu3 }
 0x3d9   : > { %v1955_v62 = vadd.f32 %v1954_v35, %v4276_v5  ;;  %v1642_v61 = vpop.f32.mrf.mxu0  ;;  %v3478_v57 = vpop.eup %3477  ;;  %v1854_v35 = vadd.f32 %v4529_v1, %v4604_v8 }
 0x3da   : > { %v4666_v26 = vadd.f32 %v1642_v61, %v4494_v27  ;;  %v1832_v61 = vpop.f32.mrf.mxu2 }
 0x3db   : > { %3479 = vtanh.f32 %v1955_v62 }
 0x3e0   : > { %v2353_v38 = vpop.f32.mrf.mxu3 }
 0x3e1   : > { %v3480_v36 = vpop.eup %3479  ;;  %v1645_v58 = vpop.f32.mrf.mxu0  ;;  %v2354_v42 = vadd.f32 %v2353_v38, %v4092_v50 }
 0x3e2   : > { %v4669_v53 = vadd.f32 %v1645_v58, %v4498_v15  ;;  %v1980_v9 = vpack.c.bf16 %v3480_v36, %v3478_v57  ;;  %v1852_v15 = vadd.f32 %v4517_v46, %v4593_v28  ;;  %v1834_v1 = vpop.f32.mrf.mxu2 }
 0x3e3   : > { %3481 = vtanh.f32 %v2354_v42  ;;  %v1856_v42 = vadd.f32 %v4548_v32, %v4615_v23 }
 0x3e4   : > { %3070 = vmatmul.msk.bf16.gmra.mxu0 %vm752_vm0, %v1980_v9 }
 0x3e8   : > { %v2355_v17 = vpop.f32.mrf.mxu3 }
 0x3e9   : > { %v2356_v63 = vadd.f32 %v2355_v17, %v4097_v7  ;;  %v1647_v27 = vpop.f32.mrf.mxu0  ;;  %v3482_v13 = vpop.eup %3481 }
 0x3ea   : > { %v4675_v3 = vadd.f32 %v1647_v27, %v4506_v16  ;;  %v1853_v16 = vadd.f32 %v4525_v24, %v4599_v33  ;;  %v1855_v33 = vadd.f32 %v4539_v40, %v4610_v2  ;;  %v1837_v40 = vpop.f32.mrf.mxu2 }
 0x3eb   : > { %3483 = vtanh.f32 %v2356_v63 }
 0x3f0   : > { %v2358_v47 = vpop.f32.mrf.mxu3 }
 0x3f1   : > { %v3484_v31 = vpop.eup %3483  ;;  %v2030_v52 = vpop.f32.mrf.mxu0  ;;  %v2359_v50 = vadd.f32 %v2358_v47, %v4108_v10 }
 0x3f2   : > { %v2409_v0 = vpack.c.bf16 %v3484_v31, %v3482_v13  ;;  %v4679_v55 = vadd.f32 %v2030_v52, %v1852_v15  ;;  %v1857_v13 = vadd.f32 %v4554_v44, %v4624_v56  ;;  %v1839_v32 = vpop.f32.mrf.mxu2  ;;  %v1859_v56 = vadd.f32 %v4567_v39, %v4635_v19 }
 0x3f3   : > { %3485 = vtanh.f32 %v2359_v50  ;;  %v1861_v19 = vadd.f32 %v1834_v1, %v4646_v49 }
 0x3f4   : > { %3111 = vmatmul.msk.bf16.vlgmr.msra.gmra.mxu0 %vm752_vm0, %v2409_v0  ;;  %v1858_v0 = vadd.f32 %v4562_v25, %v4629_v14 }
 0x3f8   : > { %v2360_v7 = vpop.f32.mrf.mxu3 }
 0x3f9   : > { %v2361_v4 = vadd.f32 %v2360_v7, %v4118_v22  ;;  %v2032_v41 = vpop.f32.mrf.mxu0  ;;  %v3486_v46 = vpop.eup %3485 }
 0x3fa   : > { %v4686_v60 = vadd.f32 %v2032_v41, %v1853_v16  ;;  %v1842_v41 = vpop.f32.mrf.mxu2 }
 0x3fb   : > { %3487 = vtanh.f32 %v2361_v4  ;;  %v3193_v4 = vld [vmem:[#allocation2] sm:$0xff] }
 0x3fc   : > { %2617 = vmatpush.bf16.msra.mxu1 %v3193_v4 }
 0x400   : > { %v2363_v28 = vpop.f32.mrf.mxu3 }
 0x401   : > { %v3488_v62 = vpop.eup %3487  ;;  %v2035_v57 = vpop.f32.mrf.mxu0  ;;  %v2364_v22 = vadd.f32 %v2363_v28, %v4129_v34 }
 0x402   : > { %v4690_v10 = vadd.f32 %v2035_v57, %v1854_v35  ;;  %v2410_v38 = vpack.c.bf16 %v3488_v62, %v3486_v46  ;;  %v1860_v62 = vadd.f32 %v1832_v61, %v4640_v30 }
 0x403   : > { %3489 = vtanh.f32 %v2364_v22 }
 0x404   : > { %3112 = vmatmul.msk.bf16.gmra.mxu0 %vm752_vm0, %v2410_v38 }
 0x408   : > { %v2365_v24 = vpop.f32.mrf.mxu3 }
 0x409   : > { %v2366_v36 = vadd.f32 %v2365_v24, %v4139_v43  ;;  %v2037_v58 = vpop.f32.mrf.mxu0  ;;  %v3490_v8 = vpop.eup %3489 }
 0x40a   : > { %v4697_v9 = vadd.f32 %v2037_v58, %v1855_v33  ;;  %v1844_v24 = vpop.f32.mrf.mxu2 }
 0x40b   : > { %3491 = vtanh.f32 %v2366_v36 }
 0x410   : > { %v2368_v21 = vpop.f32.mrf.mxu3 }
 0x411   : > { %v3492_v17 = vpop.eup %3491  ;;  %v2040_v63 = vpop.f32.mrf.mxu0  ;;  %v2369_v43 = vadd.f32 %v2368_v21, %v4150_v45  ;;  %v1862_v21 = vadd.f32 %v1837_v40, %v4650_v54 }
 0x412   : > { %v4701_v34 = vadd.f32 %v2040_v63, %v1856_v42  ;;  %v2411_v27 = vpack.c.bf16 %v3492_v17, %v3490_v8  ;;  %v1847_v30 = vpop.f32.mrf.mxu2 }
 0x413   : > { %3493 = vtanh.f32 %v2369_v43 }
 0x414   : > { %3113 = vmatmul.msk.bf16.gmra.mxu0 %vm752_vm0, %v2411_v27  ;;  %v1863_v27 = vadd.f32 %v1839_v32, %v4656_v11  ;;  %v1865_v32 = vadd.f32 %v1844_v24, %v4666_v26 }
 0x418   : > { %v2370_v2 = vpop.f32.mrf.mxu3 }
 0x419   : > { %v2371_v47 = vadd.f32 %v2370_v2, %v4164_v12  ;;  %v2042_v15 = vpop.f32.mrf.mxu0  ;;  %v3494_v23 = vpop.eup %3493 }
 0x41a   : > { %v4708_v31 = vadd.f32 %v2042_v15, %v1857_v13 }
 0x41b   : > { %3495 = vtanh.f32 %v2371_v47  ;;  %v1864_v47 = vadd.f32 %v1842_v41, %v4660_v6 }
 0x420   : > { %v2373_v52 = vpop.f32.mrf.mxu3 }
 0x421   : > { %v3496_v50 = vpop.eup %3495  ;;  %v2045_v7 = vpop.f32.mrf.mxu0  ;;  %v2374_v12 = vadd.f32 %v2373_v52, %v4176_v37 }
 0x422   : > { %v4712_v45 = vadd.f32 %v2045_v7, %v1858_v0  ;;  %v2412_v16 = vpack.c.bf16 %v3496_v50, %v3494_v23 }
 0x423   : > { %3497 = vtanh.f32 %v2374_v12  ;;  %v1866_v12 = vadd.f32 %v1847_v30, %v4669_v53  ;;  %v4759_v53 = vld [vmem:[%s4865_s7] ss:$0 sm:$0xff] }
 0x424   : > { %3114 = vmatmul.msk.bf16.gmra.mxu0 %vm752_vm0, %v2412_v16 }
 0x428   : > { %v2375_v44 = vpop.f32.mrf.mxu3 }
 0x429   : > { %v2376_v46 = vadd.f32 %v2375_v44, %v4186_v51  ;;  %v2047_v28 = vpop.f32.mrf.mxu0  ;;  %v3498_v14 = vpop.eup %3497 }
 0x42a   : > { %v4719_v25 = vadd.f32 %v2047_v28, %v1859_v56 }
 0x42b   : > { %3499 = vtanh.f32 %v2376_v46 }
 0x430   : > { %v2378_v35 = vpop.f32.mrf.mxu3 }
 0x431   : > { %v3500_v57 = vpop.eup %3499  ;;  %v2050_v38 = vpop.f32.mrf.mxu0  ;;  %v2379_v39 = vadd.f32 %v2378_v35, %v4199_v59 }
 0x432   : > { %v4722_v22 = vadd.f32 %v2050_v38, %v1860_v62  ;;  %v2413_v37 = vpack.c.bf16 %v3500_v57, %v3498_v14 }
 0x433   : > { %3501 = vtanh.f32 %v2379_v39 }
 0x434   : > { %3115 = vmatmul.msk.bf16.gmra.mxu0 %vm752_vm0, %v2413_v37 }
 0x438   : > { %v2380_v51 = vpop.f32.mrf.mxu3 }
 0x439   : > { %v2381_v33 = vadd.f32 %v2380_v51, %v4217_v20  ;;  %v2052_v36 = vpop.f32.mrf.mxu0  ;;  %v3502_v61 = vpop.eup %3501 }
 0x43a   : > { %v4728_v58 = vadd.f32 %v2052_v36, %v1861_v19  ;;  %v1849_v20 = vpop.f32.mrf.mxu2 }
 0x43b   : > { %3503 = vtanh.f32 %v2381_v33  ;;  %v1867_v26 = vadd.f32 %v1849_v20, %v4675_v3 }
 0x440   : > { %v2383_v8 = vpop.f32.mrf.mxu3 }
 0x441   : > { %v3504_v42 = vpop.eup %3503  ;;  %v2055_v17 = vpop.f32.mrf.mxu0  ;;  %v2384_v49 = vadd.f32 %v2383_v8, %v4234_v29 }
 0x442   : > { %v4731_v63 = vadd.f32 %v2055_v17, %v1862_v21  ;;  %v2414_v59 = vpack.c.bf16 %v3504_v42, %v3502_v61  ;;  %v2248_v23 = vpop.f32.mrf.mxu2 }
 0x443   : > { %3505 = vtanh.f32 %v2384_v49  ;;  %v2288_v62 = vadd.f32 %v2248_v23, %v4679_v55 }
 0x444   : > { %3116 = vmatmul.msk.bf16.gmra.mxu0 %vm752_vm0, %v2414_v59 }
 0x448   : > { %v2385_v1 = vpop.f32.mrf.mxu3 }
 0x449   : > { %v2386_v43 = vadd.f32 %v2385_v1, %v4248_v48  ;;  %v2057_v2 = vpop.f32.mrf.mxu0  ;;  %v3506_v54 = vpop.eup %3505 }
 0x44a   : > { %v4737_v13 = vadd.f32 %v2057_v2, %v1863_v27  ;;  %v2250_v6 = vpop.f32.mrf.mxu2 }
 0x44b   : > { %3507 = vtanh.f32 %v2386_v43  ;;  %v2289_v38 = vadd.f32 %v2250_v6, %v4686_v60 }
 0x450   : > { %v2388_v40 = vpop.f32.mrf.mxu3 }
 0x451   : > { %v3508_v15 = vpop.eup %3507  ;;  %v2060_v52 = vpop.f32.mrf.mxu0  ;;  %v2389_v11 = vadd.f32 %v2388_v40, %v4263_v18 }
 0x452   : > { %v4740_v0 = vadd.f32 %v2060_v52, %v1864_v47  ;;  %v2415_v29 = vpack.c.bf16 %v3508_v15, %v3506_v54  ;;  %v2253_v18 = vpop.f32.mrf.mxu2 }
 0x453   : > { %3509 = vtanh.f32 %v2389_v11  ;;  %v2290_v61 = vadd.f32 %v2253_v18, %v4690_v10 }
 0x454   : > { %3117 = vmatmul.msk.bf16.gmra.mxu0 %vm752_vm0, %v2415_v29 }
 0x458   : > { %v2390_v48 = vpop.f32.mrf.mxu3 }
 0x459   : > { %v2391_v50 = vadd.f32 %v2390_v48, %v4276_v5  ;;  %v2062_v7 = vpop.f32.mrf.mxu0  ;;  %v3510_v4 = vpop.eup %3509 }
 0x45a   : > { %v4746_v16 = vadd.f32 %v2062_v7, %v1865_v32  ;;  %v2255_v14 = vpop.f32.mrf.mxu2 }
 0x45b   : > { %3511 = vtanh.f32 %v2391_v50  ;;  %v2291_v21 = vadd.f32 %v2255_v14, %v4697_v9 }
 0x461   : > { %v3512_v44 = vpop.eup %3511  ;;  %v2065_v56 = vpop.f32.mrf.mxu0 }
 0x462   : > { %v4749_v41 = vadd.f32 %v2065_v56, %v1866_v12  ;;  %v2416_v46 = vpack.c.bf16 %v3512_v44, %v3510_v4  ;;  %v2258_v37 = vpop.f32.mrf.mxu2 }
 0x463   : > { %v2292_v2 = vadd.f32 %v2258_v37, %v4701_v34 }
 0x464   : > { %3118 = vmatmul.msk.bf16.gmra.mxu0 %vm752_vm0, %v2416_v46 }
 0x469   : > { %v2067_v5 = vpop.f32.mrf.mxu0 }
 0x46a   : > { %v4753_v28 = vadd.f32 %v2067_v5, %v1867_v26  ;;  %v2260_v55 = vpop.f32.mrf.mxu2 }
 0x46b   : > { %v2293_v40 = vadd.f32 %v2260_v55, %v4708_v31 }
 0x471   : > { %v2466_v35 = vpop.f32.mrf.mxu0 }
 0x472   : > { %v2506_v57 = vadd.f32 %v2466_v35, %v2288_v62  ;;  %v2263_v49 = vpop.f32.mrf.mxu2 }
 0x473   : > { %v2294_v50 = vadd.f32 %v2263_v49, %v4712_v45 }
 0x474   : > { %v2526_v39 = vadd.f32 %v4759_v53, %v2506_v57 }
 0x476   : > { %v2542_v19 = vmax.f32 %v2526_v39, 0.0 }
 0x479   : > { %v2468_v24 = vpop.f32.mrf.mxu0 }
 0x47a   : > { %v2507_v3 = vadd.f32 %v2468_v24, %v2289_v38  ;;  %v2265_v10 = vpop.f32.mrf.mxu2 }
 0x47b   : > { %v2295_v7 = vadd.f32 %v2265_v10, %v4719_v25 }
 0x47c   : > { %v2527_v51 = vadd.f32 %v4759_v53, %v2507_v3 }
 0x47e   : > { %v2543_v33 = vmax.f32 %v2527_v51, 0.0 }
 0x480   : > { %v2558_v36 = vpack.c.bf16 %v2543_v33, %v2542_v19 }
 0x481   : > { %v2471_v30 = vpop.f32.mrf.mxu0 }
 0x482   : > { %3127 = vmatmul.msk.bf16.vlgmr.msra.gmra.mxu1 %vm752_vm0, %v2558_v36  ;;  %v2508_v8 = vadd.f32 %v2471_v30, %v2290_v61  ;;  %v2268_v48 = vpop.f32.mrf.mxu2 }
 0x483   : > { %v2296_v5 = vadd.f32 %v2268_v48, %v4722_v22 }
 0x484   : > { %v2528_v42 = vadd.f32 %v4759_v53, %v2508_v8 }
 0x486   : > { %v2544_v20 = vmax.f32 %v2528_v42, 0.0 }
 0x489   : > { %v2473_v60 = vpop.f32.mrf.mxu0 }
 0x48a   : > { %v2509_v17 = vadd.f32 %v2473_v60, %v2291_v21  ;;  %v2270_v12 = vpop.f32.mrf.mxu2 }
 0x48b   : > { %v2297_v35 = vadd.f32 %v2270_v12, %v4728_v58 }
 0x48c   : > { %v2529_v59 = vadd.f32 %v4759_v53, %v2509_v17 }
 0x48e   : > { %v2545_v1 = vmax.f32 %v2529_v59, 0.0 }
 0x490   : > { %v2559_v27 = vpack.c.bf16 %v2545_v1, %v2544_v20 }
 0x491   : > { %v2476_v43 = vpop.f32.mrf.mxu0 }
 0x492   : > { %3128 = vmatmul.msk.bf16.gmra.mxu1 %vm752_vm0, %v2559_v27  ;;  %v2510_v54 = vadd.f32 %v2476_v43, %v2292_v2  ;;  %v2273_v14 = vpop.f32.mrf.mxu2 }
 0x493   : > { %v2298_v19 = vadd.f32 %v2273_v14, %v4731_v63 }
 0x494   : > { %v2530_v47 = vadd.f32 %v4759_v53, %v2510_v54 }
 0x496   : > { %v2546_v52 = vmax.f32 %v2530_v47, 0.0 }
 0x499   : > { %v2478_v9 = vpop.f32.mrf.mxu0 }
 0x49a   : > { %v2511_v15 = vadd.f32 %v2478_v9, %v2293_v40  ;;  %v2275_v39 = vpop.f32.mrf.mxu2 }
 0x49b   : > { %v2299_v33 = vadd.f32 %v2275_v39, %v4737_v13 }
 0x49c   : > { %v2531_v23 = vadd.f32 %v4759_v53, %v2511_v15 }
 0x49e   : > { %v2547_v29 = vmax.f32 %v2531_v23, 0.0 }
 0x4a0   : > { %v2560_v11 = vpack.c.bf16 %v2547_v29, %v2546_v52 }
 0x4a1   : > { %v2481_v32 = vpop.f32.mrf.mxu0 }
 0x4a2   : > { %3129 = vmatmul.msk.bf16.gmra.mxu1 %vm752_vm0, %v2560_v11  ;;  %v2512_v34 = vadd.f32 %v2481_v32, %v2294_v50  ;;  %v2278_v36 = vpop.f32.mrf.mxu2 }
 0x4a3   : > { %v2300_v59 = vadd.f32 %v2278_v36, %v4740_v0 }
 0x4a4   : > { %v2532_v31 = vadd.f32 %v4759_v53, %v2512_v34 }
 0x4a6   : > { %v2548_v56 = vmax.f32 %v2532_v31, 0.0 }
 0x4a9   : > { %v2483_v6 = vpop.f32.mrf.mxu0 }
 0x4aa   : > { %v2513_v4 = vadd.f32 %v2483_v6, %v2295_v7  ;;  %v2280_v17 = vpop.f32.mrf.mxu2 }
 0x4ab   : > { %v2301_v49 = vadd.f32 %v2280_v17, %v4746_v16 }
 0x4ac   : > { %v2533_v44 = vadd.f32 %v4759_v53, %v2513_v4 }
 0x4ae   : > { %v2549_v46 = vmax.f32 %v2533_v44, 0.0 }
 0x4b0   : > { %v2561_v18 = vpack.c.bf16 %v2549_v46, %v2548_v56 }
 0x4b1   : > { %v2486_v26 = vpop.f32.mrf.mxu0 }
 0x4b2   : > { %3130 = vmatmul.msk.bf16.gmra.mxu1 %vm752_vm0, %v2561_v18  ;;  %v2514_v45 = vadd.f32 %v2486_v26, %v2296_v5  ;;  %v2283_v43 = vpop.f32.mrf.mxu2 }
 0x4b3   : > { %v2302_v0 = vadd.f32 %v2283_v43, %v4749_v41  ;;  %v3256_v41 = vld [vmem:[%s4867_s9] ss:$0 sm:$0xff] }
 0x4b4   : > { %v2534_v62 = vadd.f32 %v4759_v53, %v2514_v45 }
 0x4b6   : > { %v2550_v37 = vmax.f32 %v2534_v62, 0.0 }
 0x4b9   : > { %v2488_v25 = vpop.f32.mrf.mxu0 }
 0x4ba   : > { %v2515_v57 = vadd.f32 %v2488_v25, %v2297_v35  ;;  %v2285_v47 = vpop.f32.mrf.mxu2 }
 0x4bb   : > { %v2303_v16 = vadd.f32 %v2285_v47, %v4753_v28 }
 0x4bc   : > { %v2535_v38 = vadd.f32 %v4759_v53, %v2515_v57 }
 0x4be   : > { %v2551_v24 = vmax.f32 %v2535_v38, 0.0 }
 0x4c0   : > { %v2562_v3 = vpack.c.bf16 %v2551_v24, %v2550_v37 }
 0x4c1   : > { %v2491_v51 = vpop.f32.mrf.mxu0 }
 0x4c2   : > { %3131 = vmatmul.msk.bf16.gmra.mxu1 %vm752_vm0, %v2562_v3  ;;  %v2516_v22 = vadd.f32 %v2491_v51, %v2298_v19 }
 0x4c4   : > { %v2536_v30 = vadd.f32 %v4759_v53, %v2516_v22 }
 0x4c6   : > { %v2552_v8 = vmax.f32 %v2536_v30, 0.0 }
 0x4c9   : > { %v2493_v58 = vpop.f32.mrf.mxu0 }
 0x4ca   : > { %v2517_v55 = vadd.f32 %v2493_v58, %v2299_v33 }
 0x4cc   : > { %v2537_v61 = vadd.f32 %v4759_v53, %v2517_v55 }
 0x4ce   : > { %v2553_v21 = vmax.f32 %v2537_v61, 0.0 }
 0x4d0   : > { %v2563_v60 = vpack.c.bf16 %v2553_v21, %v2552_v8 }
 0x4d1   : > { %v2496_v42 = vpop.f32.mrf.mxu0 }
 0x4d2   : > { %3132 = vmatmul.msk.bf16.gmra.mxu1 %vm752_vm0, %v2563_v60  ;;  %v2518_v63 = vadd.f32 %v2496_v42, %v2300_v59 }
 0x4d4   : > { %v2538_v20 = vadd.f32 %v4759_v53, %v2518_v63 }
 0x4d6   : > { %v2554_v2 = vmax.f32 %v2538_v20, 0.0 }
 0x4d9   : > { %v2498_v13 = vpop.f32.mrf.mxu0 }
 0x4da   : > { %v2519_v1 = vadd.f32 %v2498_v13, %v2301_v49 }
 0x4dc   : > { %v2539_v27 = vadd.f32 %v4759_v53, %v2519_v1 }
 0x4de   : > { %v2555_v54 = vmax.f32 %v2539_v27, 0.0 }
 0x4e0   : > { %v2564_v10 = vpack.c.bf16 %v2555_v54, %v2554_v2 }
 0x4e1   : > { %v2501_v40 = vpop.f32.mrf.mxu0 }
 0x4e2   : > { %3133 = vmatmul.msk.bf16.gmra.mxu1 %vm752_vm0, %v2564_v10  ;;  %v2520_v9 = vadd.f32 %v2501_v40, %v2302_v0 }
 0x4e4   : > { %v2540_v23 = vadd.f32 %v4759_v53, %v2520_v9 }
 0x4e6   : > { %v2556_v11 = vmax.f32 %v2540_v23, 0.0 }
 0x4e9   : > { %v2503_v15 = vpop.f32.mrf.mxu0 }
 0x4ea   : > { %v2521_v52 = vadd.f32 %v2503_v15, %v2303_v16 }
 0x4ec   : > { %v2541_v29 = vadd.f32 %v4759_v53, %v2521_v52 }
 0x4ee   : > { %v2557_v48 = vmax.f32 %v2541_v29, 0.0 }
 0x4f0   : > { %v2565_v32 = vpack.c.bf16 %v2557_v48, %v2556_v11 }
 0x4f2   : > { %3134 = vmatmul.msk.bf16.gmra.mxu1 %vm752_vm0, %v2565_v32 }
 0x4ff   : > { %v2619_v50 = vpop.f32.mrf.mxu1 }
 0x500   : > { %v2620_v28 = vadd.f32 %v3256_v41, %v2619_v50 }
 0x502   : > { %2659 = vst [vmem:[%s4806_s20] sm:$0xff] %v2620_v28 }
 0x507   : > { %v2621_v53 = vpop.f32.mrf.mxu1 }
 0x508   : > { %v2622_v34 = vadd.f32 %v3256_v41, %v2621_v53 }
 0x50a   : > { %2660 = vst [vmem:[%s4806_s20 + $0x8] sm:$0xff] %v2622_v34 }
 0x50f   : > { %v2624_v7 = vpop.f32.mrf.mxu1 }
 0x510   : > { %v2625_v6 = vadd.f32 %v3256_v41, %v2624_v7 }
 0x512   : > { %2661 = vst [vmem:[%s4806_s20 + $0x10] sm:$0xff] %v2625_v6 }
 0x517   : > { %v2626_v31 = vpop.f32.mrf.mxu1 }
 0x518   : > { %v2627_v4 = vadd.f32 %v3256_v41, %v2626_v31 }
 0x51a   : > { %2662 = vst [vmem:[%s4806_s20 + $0x18] sm:$0xff] %v2627_v4 }
 0x51f   : > { %v2629_v12 = vpop.f32.mrf.mxu1 }
 0x520   : > { %v2630_v44 = vadd.f32 %v3256_v41, %v2629_v12 }
 0x522   : > { %2663 = vst [vmem:[%s4806_s20 + $0x20] sm:$0xff] %v2630_v44 }
 0x527   : > { %v2631_v56 = vpop.f32.mrf.mxu1 }
 0x528   : > { %v2632_v46 = vadd.f32 %v3256_v41, %v2631_v56 }
 0x52a   : > { %2664 = vst [vmem:[%s4806_s20 + $0x28] sm:$0xff] %v2632_v46 }
 0x52f   : > { %v2634_v18 = vpop.f32.mrf.mxu1 }
 0x530   : > { %v2635_v26 = vadd.f32 %v3256_v41, %v2634_v18 }
 0x532   : > { %2665 = vst [vmem:[%s4806_s20 + $0x30] sm:$0xff] %v2635_v26 }
 0x537   : > { %v2636_v5 = vpop.f32.mrf.mxu1 }
 0x538   : > { %v2637_v14 = vadd.f32 %v3256_v41, %v2636_v5 }
 0x53a   : > { %2666 = vst [vmem:[%s4806_s20 + $0x38] sm:$0xff] %v2637_v14 }
 0x53f   : > { %v2639_v45 = vpop.f32.mrf.mxu1 }
 0x540   : > { %v2640_v35 = vadd.f32 %v3256_v41, %v2639_v45 }
 0x542   : > { %2667 = vst [vmem:[%s4806_s20 + $0x40] sm:$0xff] %v2640_v35 }
 0x547   : > { %v2641_v25 = vpop.f32.mrf.mxu1 }
 0x548   : > { %v2642_v62 = vadd.f32 %v3256_v41, %v2641_v25 }
 0x54a   : > { %2668 = vst [vmem:[%s4806_s20 + $0x48] sm:$0xff] %v2642_v62 }
 0x54f   : > { %v2644_v57 = vpop.f32.mrf.mxu1 }
 0x550   : > { %v2645_v38 = vadd.f32 %v3256_v41, %v2644_v57 }
 0x552   : > { %2669 = vst [vmem:[%s4806_s20 + $0x50] sm:$0xff] %v2645_v38 }
 0x557   : > { %v2646_v37 = vpop.f32.mrf.mxu1 }
 0x558   : > { %v2647_v24 = vadd.f32 %v3256_v41, %v2646_v37 }
 0x55a   : > { %2670 = vst [vmem:[%s4806_s20 + $0x58] sm:$0xff] %v2647_v24 }
 0x55f   : > { %v2649_v39 = vpop.f32.mrf.mxu1 }
 0x560   : > { %v2650_v3 = vadd.f32 %v3256_v41, %v2649_v39 }
 0x562   : > { %2671 = vst [vmem:[%s4806_s20 + $0x60] sm:$0xff] %v2650_v3 }
 0x567   : > { %v2651_v51 = vpop.f32.mrf.mxu1 }
 0x568   : > { %v2652_v19 = vadd.f32 %v3256_v41, %v2651_v51 }
 0x56a   : > { %2672 = vst [vmem:[%s4806_s20 + $0x68] sm:$0xff] %v2652_v19 }
 0x56f   : > { %v2654_v22 = vpop.f32.mrf.mxu1 }
 0x570   : > { %v2655_v33 = vadd.f32 %v3256_v41, %v2654_v22 }
 0x572   : > { %2673 = vst [vmem:[%s4806_s20 + $0x70] sm:$0xff] %v2655_v33 }
 0x577   : > { %v2656_v36 = vpop.f32.mrf.mxu1 }
 0x578   : > { %v2657_v58 = vadd.f32 %v3256_v41, %v2656_v36 }
 0x57a   : > { %2674 = vst [vmem:[%s4806_s20 + $0x78] sm:$0xff] %v2657_v58 }
 0x57b   : > { %3572 = shalt.err (!%p3569_p8)
}
 0x57c   : > { %s3619_s8 = smov 128   ;;  %s3620_s20 = smov 8  }
 0x57d   : > { %3200 = dma.vmem_to_hbm [thread:$0]  (%p3714_p5), %s2689_s28, 2048, %s2691_s29, %s2676_s30, %s3619_s8, %s3619_s8, %s3620_s20  }
 0x57e PF: > { %p3212_p9 = scmp.ge.s32.totalorder %s3611_s16, 2  ;;  %s2705_s27 = sand.u32 1, %s3599_s13  }
 0x57f   : > { %s2706_s18 = scalar_lea.sflag [#allocation4], %s2705_s27 }
 0x580   : > { %p3207_p10 = pnand %p3212_p9, %p3718_p6 }
 0x582   : > { %p3208_p11 = pneg %p3207_p10 }
 0x584   : > { %3594 = dma.done.wait (%p3208_p11), %s2706_s18, 2048  }
 0x585   : > { %3596 = vsyncadd (%p3208_p11), %s2706_s18, 4294965248  ;;  %p21_p12 = scmp.ge.s32.totalorder %s3701_s19, 4   ;;  %s4885_s13 = smov %s3603_s14 }
 0x586   : > { %s4886_s14 = smov %s3607_s15  ;;  %s4887_s15 = smov %s3712_s22 }
 0x587   : > { %s4888_s16 = smov %s3701_s19  ;;  %23 = sbr.rel (!%p21_p12) target bundleno = 6 (0x6), region = 100 }
 0x58c   :  { %2712 = vsyncpa [#allocation3], 1 }
 0x58d   :  { %2714 = vsyncpa [#allocation3 + $0x1], 1 }
 0x58e   :  { %2715 = vsyncpa [#allocation4], 1 }
 0x58f   :  { %2717 = vsyncpa [#allocation4 + $0x1], 1 }

</bundles_post_ra>
